<compile_context>
chip_gen: v7x
topology: tpu7x:2x2x1
jax: 0.10.0
libtpu: 0.0.40
codegen_flags: <defaults>
</compile_context>

<pallas_src>
import math

import numpy as np
import jax
import jax.numpy as jnp
from jax.experimental import pallas as pl
from jax.experimental.pallas import tpu as pltpu

# ---------------- config (small synthetic BERT-like backbone) ----------------
B = 2            # batch
S = 8            # sequence length
H = 32           # hidden size
NH = 4           # attention heads
HD = H // NH     # head dim
F = 64           # FFN intermediate size
L = 2            # encoder layers
C = 2            # num_labels
VOCAB = 100
VOCAB_PAD = 128  # one-hot lane width / padded word-emb rows
LN_EPS = 1e-12   # BERT layer-norm epsilon
NEG_INF = -1e9
LANES = 128

# Packed-slab layout constants (row-stacked, every block starts at column 0).
MAT_ROWS_PER_LAYER = 3 * H + F                 # qkv(32) + wo(32) + w1(32) + w2(64)
WMAT_ROWS = L * MAT_ROWS_PER_LAYER + VOCAB_PAD + H   # + word_emb(128) + wc(32)
VEC_ROWS_PER_LAYER = 8
WVEC_ROWS = L * VEC_ROWS_PER_LAYER + S + 3           # + pos_plus(S) + emb_g/b + bc


# ----------------------------- kernel helpers --------------------------------
def _layernorm2d(x, gamma, beta):
    # x: [N, H] fp32, gamma/beta: [1, H] fp32
    mu = jnp.mean(x, axis=-1, keepdims=True)
    var = jnp.mean(jnp.square(x - mu), axis=-1, keepdims=True)
    return (x - mu) * jax.lax.rsqrt(var + LN_EPS) * gamma + beta


def _erf_poly(x):
    # Abramowitz & Stegun 7.1.26 rational approximation, |error| <= 1.5e-7
    # (plus ~1e-4 from the approximate EUP reciprocal, well inside tolerance).
    a1, a2, a3, a4, a5 = (0.254829592, -0.284496736, 1.421413741,
                          -1.453152027, 1.061405429)
    pc = 0.3275911
    ax = jnp.abs(x)
    t = pl.reciprocal(1.0 + pc * ax, approx=True)          # EUP slot, not VALU
    poly = ((((a5 * t + a4) * t + a3) * t + a2) * t + a1) * t
    y = 1.0 - poly * jnp.exp(-ax * ax)
    return jnp.where(x >= 0.0, y, -y)


def _gelu_erf(x):
    return 0.5 * x * (1.0 + _erf_poly(x * (1.0 / math.sqrt(2.0))))


# --------------------------------- kernel ------------------------------------
def phishsleuth_kernel(ids_ref, amask_ref, wmat_ref, wvec_ref, out_ref):
    f32 = jnp.float32
    bf16 = jnp.bfloat16
    gm0 = L * MAT_ROWS_PER_LAYER          # global rows in wmat (word_emb, wc)
    gv0 = L * VEC_ROWS_PER_LAYER          # global rows in wvec (pos, emb LN, bc)

    # ---- embedding gather (one-hot x word_emb on the MXU) + pos/type + LN ----
    ids = ids_ref[...]                                           # [B*S, 1] int32
    vocab_iota = jax.lax.broadcasted_iota(jnp.int32, (B * S, VOCAB_PAD), 1)
    onehot = jnp.where(vocab_iota == ids, 1.0, 0.0).astype(bf16)  # [B*S, 128]
    x = jnp.dot(onehot, wmat_ref[gm0:gm0 + VOCAB_PAD, 0:H],
                preferred_element_type=f32)                       # [B*S, H] f32
    pos_plus = wvec_ref[gv0:gv0 + S, 0:H]                         # [S, H] f32
    x = (x.reshape(B, S, H) + pos_plus[None, :, :]).reshape(B * S, H)
    x = _layernorm2d(x,
                     wvec_ref[gv0 + S + 0:gv0 + S + 1, 0:H],
                     wvec_ref[gv0 + S + 1:gv0 + S + 2, 0:H])

    # ---- additive attention mask (built in-kernel) ----
    amask = amask_ref[...].astype(f32)                            # [B, S]
    mask_add = ((1.0 - amask) * NEG_INF)[:, None, :]              # [B, 1, S]

    for l in range(L):                                   # static unroll (L=2)
        r0 = l * MAT_ROWS_PER_LAYER
        v0 = l * VEC_ROWS_PER_LAYER

        # ---- fused QKV projection, padded to 128 output lanes (lane-dense) ----
        # (1/sqrt(HD) already folded into the Q weight & bias at pack time)
        qkv = jnp.dot(x.astype(bf16), wmat_ref[r0:r0 + H, :],
                      preferred_element_type=f32) + wvec_ref[v0:v0 + 1, :]
        # qkv: [B*S, 128]; cols 0:96 = [q | k | v], cols 96:128 zero padding.

        # ---- per-head attention (static loop, single-batch einsums) ----
        ctx_heads = []
        for h in range(NH):                              # static unroll (NH=4)
            q = qkv[:, h * HD:(h + 1) * HD].reshape(B, S, HD)
            k = qkv[:, H + h * HD:H + (h + 1) * HD].reshape(B, S, HD)
            v = qkv[:, 2 * H + h * HD:2 * H + (h + 1) * HD].reshape(B, S, HD)

            s = jnp.einsum('bqd,bkd->bqk', q, k, preferred_element_type=f32)
            s = s + mask_add                             # mask padded keys
            s = s - jnp.max(s, axis=-1, keepdims=True)
            prob = jnp.exp(s)
            prob = prob * pl.reciprocal(
                jnp.sum(prob, axis=-1, keepdims=True), approx=True)
            ctx_heads.append(jnp.einsum('bqk,bkd->bqd', prob, v,
                                        preferred_element_type=f32))

        # ---- output projection over concatenated heads (col-0 weight block) ----
        ctx = jnp.concatenate(ctx_heads, axis=-1).reshape(B * S, H)
        attn = jnp.dot(ctx.astype(bf16), wmat_ref[r0 + H:r0 + 2 * H, 0:H],
                       preferred_element_type=f32) + wvec_ref[v0 + 1:v0 + 2, 0:H]
        x = _layernorm2d(x + attn,
                         wvec_ref[v0 + 2:v0 + 3, 0:H],
                         wvec_ref[v0 + 3:v0 + 4, 0:H])

        # ------------------------------ FFN -------------------------------
        h1 = jnp.dot(x.astype(bf16), wmat_ref[r0 + 2 * H:r0 + 3 * H, 0:F],
                     preferred_element_type=f32) + wvec_ref[v0 + 4:v0 + 5, 0:F]
        h1 = _gelu_erf(h1)                               # erf-GELU (fp32)
        ffn = jnp.dot(h1.astype(bf16), wmat_ref[r0 + 3 * H:r0 + 3 * H + F, 0:H],
                      preferred_element_type=f32) + wvec_ref[v0 + 5:v0 + 6, 0:H]
        x = _layernorm2d(x + ffn,
                         wvec_ref[v0 + 6:v0 + 7, 0:H],
                         wvec_ref[v0 + 7:v0 + 8, 0:H])

    # CLS pooling + classifier (dropout(p=0.2) is identity at inference).
    cls_tok = x.reshape(B, S, H)[:, 0, :]                         # [B, H]
    wc = wmat_ref[gm0 + VOCAB_PAD:gm0 + VOCAB_PAD + H, 0:C]        # [H, C] bf16
    bc = wvec_ref[gv0 + S + 2:gv0 + S + 3, 0:C]                    # [1, C]
    out_ref[...] = jnp.dot(cls_tok.astype(bf16), wc,
                           preferred_element_type=f32) + bc


# ------------------------------ params & packing -----------------------------
def init_params(key):
    ks = iter(jax.random.split(key, 32))
    nrm = lambda k, shp: (jax.random.normal(k, shp, jnp.float32) * 0.02)
    return {
        'word_emb': nrm(next(ks), (VOCAB, H)),
        'pos_emb':  nrm(next(ks), (S, H)),
        'type_emb': nrm(next(ks), (2, H)),
        'emb_g': jnp.ones((1, H), jnp.float32),
        'emb_b': jnp.zeros((1, H), jnp.float32),
        'wq': nrm(next(ks), (L, NH, H, HD)), 'bq': jnp.zeros((L, NH, HD), jnp.float32),
        'wk': nrm(next(ks), (L, NH, H, HD)), 'bk': jnp.zeros((L, NH, HD), jnp.float32),
        'wv': nrm(next(ks), (L, NH, H, HD)), 'bv': jnp.zeros((L, NH, HD), jnp.float32),
        'wo': nrm(next(ks), (L, NH, HD, H)), 'bo': jnp.zeros((L, H), jnp.float32),
        'ln1_g': jnp.ones((L, H), jnp.float32), 'ln1_b': jnp.zeros((L, H), jnp.float32),
        'w1': nrm(next(ks), (L, H, F)), 'b1': jnp.zeros((L, F), jnp.float32),
        'w2': nrm(next(ks), (L, F, H)), 'b2': jnp.zeros((L, H), jnp.float32),
        'ln2_g': jnp.ones((L, H), jnp.float32), 'ln2_b': jnp.zeros((L, H), jnp.float32),
        'wc': nrm(next(ks), (H, C)), 'bc': jnp.zeros((1, C), jnp.float32),
    }


def pack_params(p):
    """Pack all weights into two slabs (host-side, one-time).

    wmat: bf16 [WMAT_ROWS, 128], weight blocks stacked along rows, every block
          starts at column 0 (QKV block zero-padded to 128 output columns).
    wvec: fp32 [WVEC_ROWS, 128], biases / LN params / pos+type rows / bc.
    """
    scale = 1.0 / math.sqrt(HD)
    wmat = np.zeros((WMAT_ROWS, LANES), np.float32)
    wvec = np.zeros((WVEC_ROWS, LANES), np.float32)
    for l in range(L):
        r0 = l * MAT_ROWS_PER_LAYER
        v0 = l * VEC_ROWS_PER_LAYER
        # Per-head weights -> fused [H, NH*HD] matrices, head-major columns.
        wq_f = np.transpose(np.asarray(p['wq'][l]), (1, 0, 2)).reshape(H, H) * scale
        wk_f = np.transpose(np.asarray(p['wk'][l]), (1, 0, 2)).reshape(H, H)
        wv_f = np.transpose(np.asarray(p['wv'][l]), (1, 0, 2)).reshape(H, H)
        wmat[r0:r0 + H, 0:H] = wq_f
        wmat[r0:r0 + H, H:2 * H] = wk_f
        wmat[r0:r0 + H, 2 * H:3 * H] = wv_f                 # cols 96:128 stay zero
        wmat[r0 + H:r0 + 2 * H, 0:H] = np.asarray(p['wo'][l]).reshape(H, H)
        wmat[r0 + 2 * H:r0 + 3 * H, 0:F] = np.asarray(p['w1'][l])
        wmat[r0 + 3 * H:r0 + 3 * H + F, 0:H] = np.asarray(p['w2'][l])
        # Packed per-layer vectors (all starting at column 0).
        wvec[v0 + 0, 0:H] = np.asarray(p['bq'][l]).reshape(-1) * scale
        wvec[v0 + 0, H:2 * H] = np.asarray(p['bk'][l]).reshape(-1)
        wvec[v0 + 0, 2 * H:3 * H] = np.asarray(p['bv'][l]).reshape(-1)
        wvec[v0 + 1, 0:H] = np.asarray(p['bo'][l])
        wvec[v0 + 2, 0:H] = np.asarray(p['ln1_g'][l])
        wvec[v0 + 3, 0:H] = np.asarray(p['ln1_b'][l])
        wvec[v0 + 4, 0:F] = np.asarray(p['b1'][l])
        wvec[v0 + 5, 0:H] = np.asarray(p['b2'][l])
        wvec[v0 + 6, 0:H] = np.asarray(p['ln2_g'][l])
        wvec[v0 + 7, 0:H] = np.asarray(p['ln2_b'][l])
    gm0 = L * MAT_ROWS_PER_LAYER
    wmat[gm0:gm0 + VOCAB, 0:H] = np.asarray(p['word_emb'])          # padded to 128 rows
    wmat[gm0 + VOCAB_PAD:gm0 + VOCAB_PAD + H, 0:C] = np.asarray(p['wc'])
    gv0 = L * VEC_ROWS_PER_LAYER
    wvec[gv0:gv0 + S, 0:H] = (np.asarray(p['pos_emb'])
                              + np.asarray(p['type_emb'][0])[None, :])
    wvec[gv0 + S + 0, 0:H] = np.asarray(p['emb_g']).reshape(-1)
    wvec[gv0 + S + 1, 0:H] = np.asarray(p['emb_b']).reshape(-1)
    wvec[gv0 + S + 2, 0:C] = np.asarray(p['bc']).reshape(-1)
    return (jnp.asarray(wmat, dtype=jnp.bfloat16),
            jnp.asarray(wvec, dtype=jnp.float32))


# --------------------------------- wrapper ------------------------------------
def phishsleuth_forward(input_ids, attention_mask, wmat, wvec):
    # Only layout-trivial reshape/casts on the host; gather + mask are in-kernel.
    ids = input_ids.reshape(B * S, 1).astype(jnp.int32)
    amask = attention_mask.astype(jnp.int32)
    vmem = pl.BlockSpec(memory_space=pltpu.MemorySpace.VMEM)
    return pl.pallas_call(
        phishsleuth_kernel,
        out_shape=jax.ShapeDtypeStruct((B, C), jnp.float32),
        in_specs=[vmem, vmem, vmem, vmem],
        out_specs=vmem,
    )(ids, amask, wmat, wvec)


# ------------------------- pure-JAX reference (sanity) -----------------------
def reference_forward(input_ids, attention_mask, p):
    def ln(x, g, b):
        mu = jnp.mean(x, -1, keepdims=True)
        var = jnp.mean((x - mu) ** 2, -1, keepdims=True)
        return (x - mu) / jnp.sqrt(var + LN_EPS) * g + b

    x = (p['word_emb'][input_ids] + p['pos_emb'][None]
         + p['type_emb'][0][None, None]).astype(jnp.float32)
    x = ln(x, p['emb_g'].reshape(1, 1, H), p['emb_b'].reshape(1, 1, H))
    mask_add = ((1.0 - attention_mask.astype(jnp.float32)) * -1e9)[:, None, :]
    scale = 1.0 / math.sqrt(HD)
    for l in range(L):
        attn = jnp.zeros_like(x)
        for h in range(NH):
            q = x @ p['wq'][l, h] + p['bq'][l, h]
            k = x @ p['wk'][l, h] + p['bk'][l, h]
            v = x @ p['wv'][l, h] + p['bv'][l, h]
            s = jnp.einsum('bqd,bkd->bqk', q, k) * scale + mask_add
            pr = jax.nn.softmax(s, axis=-1)
            attn = attn + jnp.einsum('bqk,bkd->bqd', pr, v) @ p['wo'][l, h]
        attn = attn + p['bo'][l]
        x = ln(x + attn, p['ln1_g'][l], p['ln1_b'][l])
        hdn = x @ p['w1'][l] + p['b1'][l]
        hdn = 0.5 * hdn * (1.0 + jax.scipy.special.erf(hdn / jnp.sqrt(2.0)))
        ffn = hdn @ p['w2'][l] + p['b2'][l]
        x = ln(x + ffn, p['ln2_g'][l], p['ln2_b'][l])
    return x[:, 0, :] @ p['wc'] + p['bc']


if __name__ == "__main__":
    key = jax.random.PRNGKey(0)
    k_ids, k_params = jax.random.split(key)

    input_ids = jax.random.randint(k_ids, (B, S), 0, VOCAB, dtype=jnp.int32)
    attention_mask = jnp.ones((B, S), jnp.int32)
    attention_mask = attention_mask.at[1, -2:].set(0)   # exercise key masking

    params = init_params(k_params)
    wmat, wvec = pack_params(params)                    # one-time host packing

    logits = phishsleuth_forward(input_ids, attention_mask, wmat, wvec)
    logits = jax.block_until_ready(logits)

    assert logits.shape == (B, C) and logits.dtype == jnp.float32
    assert bool(jnp.all(jnp.isfinite(logits)))

    ref = reference_forward(input_ids, attention_mask, params)
    max_err = float(jnp.max(jnp.abs(logits - ref)))
    assert max_err < 2e-2, f"kernel/reference mismatch: {max_err}"

    print("KERNEL_OK")
</pallas_src>

<mosaic_0001>
module attributes {stable_mosaic.version = 11 : i64} {
  func.func @phishsleuth_kernel(%arg0: memref<16x1xi32, #tpu.memory_space<vmem>>, %arg1: memref<2x8xi32, #tpu.memory_space<vmem>>, %arg2: memref<480x128xbf16, #tpu.memory_space<vmem>>, %arg3: memref<27x128xf32, #tpu.memory_space<vmem>>, %arg4: memref<2x2xf32, #tpu.memory_space<vmem>>) attributes {dimension_semantics = [], scalar_prefetch = 0 : i64, scratch_operands = 0 : i64, tpu.core_type = #tpu.core_type<tc>} {
    %c0 = arith.constant 0 : index
    %c0_0 = arith.constant 0 : index
    %0 = vector.load %arg0[%c0, %c0_0] : memref<16x1xi32, #tpu.memory_space<vmem>>, vector<16x1xi32>
    %1 = tpu.iota {dimensions = array<i32: 1>} : vector<16x128xi32>
    %2 = vector.broadcast %0 : vector<16x1xi32> to vector<16x128xi32>
    %3 = arith.cmpi eq, %1, %2 : vector<16x128xi32>
    %cst = arith.constant 1.000000e+00 : f32
    %cst_1 = arith.constant 0.000000e+00 : f32
    %4 = vector.broadcast %cst : f32 to vector<16x128xf32>
    %5 = vector.broadcast %cst_1 : f32 to vector<16x128xf32>
    %6 = arith.select %3, %4, %5 : vector<16x128xi1>, vector<16x128xf32>
    %7 = arith.truncf %6 : vector<16x128xf32> to vector<16x128xbf16>
    %c320 = arith.constant 320 : index
    %c0_2 = arith.constant 0 : index
    %8 = vector.load %arg2[%c320, %c0_2] : memref<480x128xbf16, #tpu.memory_space<vmem>>, vector<128x32xbf16>
    %cst_3 = arith.constant dense<0.000000e+00> : vector<16x32xf32>
    %9 = tpu.matmul %7, %8, %cst_3 {dimension_numbers = #tpu.dot_dimension_numbers<[1], [0], [0], [1], [0, 0, 1, 1], [], []>} : vector<16x128xbf16>, vector<128x32xbf16>, vector<16x32xf32> -> vector<16x32xf32>
    %c16 = arith.constant 16 : index
    %c0_4 = arith.constant 0 : index
    %10 = vector.load %arg3[%c16, %c0_4] : memref<27x128xf32, #tpu.memory_space<vmem>>, vector<8x32xf32>
    %11 = vector.shape_cast %9 : vector<16x32xf32> to vector<2x8x32xf32>
    %12 = vector.shape_cast %10 : vector<8x32xf32> to vector<1x8x32xf32>
    %13 = vector.broadcast %12 : vector<1x8x32xf32> to vector<2x8x32xf32>
    %14 = arith.addf %11, %13 : vector<2x8x32xf32>
    %15 = vector.shape_cast %14 : vector<2x8x32xf32> to vector<16x32xf32>
    %c24 = arith.constant 24 : index
    %c0_5 = arith.constant 0 : index
    %16 = vector.load %arg3[%c24, %c0_5] : memref<27x128xf32, #tpu.memory_space<vmem>>, vector<1x32xf32>
    %c25 = arith.constant 25 : index
    %c0_6 = arith.constant 0 : index
    %17 = vector.load %arg3[%c25, %c0_6] : memref<27x128xf32, #tpu.memory_space<vmem>>, vector<1x32xf32>
    %cst_7 = arith.constant dense<0.000000e+00> : vector<16xf32>
    %18 = vector.multi_reduction <add>, %15, %cst_7 [1] : vector<16x32xf32> to vector<16xf32>
    %19 = vector.shape_cast %18 : vector<16xf32> to vector<16x1xf32>
    %cst_8 = arith.constant 3.200000e+01 : f32
    %20 = vector.broadcast %cst_8 : f32 to vector<16x1xf32>
    %21 = arith.divf %19, %20 : vector<16x1xf32>
    %22 = vector.broadcast %21 : vector<16x1xf32> to vector<16x32xf32>
    %23 = arith.subf %15, %22 : vector<16x32xf32>
    %24 = arith.mulf %23, %23 : vector<16x32xf32>
    %cst_9 = arith.constant dense<0.000000e+00> : vector<16xf32>
    %25 = vector.multi_reduction <add>, %24, %cst_9 [1] : vector<16x32xf32> to vector<16xf32>
    %26 = vector.shape_cast %25 : vector<16xf32> to vector<16x1xf32>
    %cst_10 = arith.constant 3.200000e+01 : f32
    %27 = vector.broadcast %cst_10 : f32 to vector<16x1xf32>
    %28 = arith.divf %26, %27 : vector<16x1xf32>
    %29 = vector.broadcast %21 : vector<16x1xf32> to vector<16x32xf32>
    %30 = arith.subf %15, %29 : vector<16x32xf32>
    %cst_11 = arith.constant 9.99999996E-13 : f32
    %31 = vector.broadcast %cst_11 : f32 to vector<16x1xf32>
    %32 = arith.addf %28, %31 : vector<16x1xf32>
    %33 = math.rsqrt %32 : vector<16x1xf32>
    %34 = vector.broadcast %33 : vector<16x1xf32> to vector<16x32xf32>
    %35 = arith.mulf %30, %34 : vector<16x32xf32>
    %36 = vector.broadcast %16 : vector<1x32xf32> to vector<16x32xf32>
    %37 = arith.mulf %35, %36 : vector<16x32xf32>
    %38 = vector.broadcast %17 : vector<1x32xf32> to vector<16x32xf32>
    %39 = arith.addf %37, %38 : vector<16x32xf32>
    %c0_12 = arith.constant 0 : index
    %c0_13 = arith.constant 0 : index
    %40 = vector.load %arg1[%c0_12, %c0_13] : memref<2x8xi32, #tpu.memory_space<vmem>>, vector<2x8xi32>
    %41 = arith.sitofp %40 : vector<2x8xi32> to vector<2x8xf32>
    %cst_14 = arith.constant 1.000000e+00 : f32
    %42 = vector.broadcast %cst_14 : f32 to vector<2x8xf32>
    %43 = arith.subf %42, %41 : vector<2x8xf32>
    %cst_15 = arith.constant -1.000000e+09 : f32
    %44 = vector.broadcast %cst_15 : f32 to vector<2x8xf32>
    %45 = arith.mulf %43, %44 : vector<2x8xf32>
    %46 = vector.shape_cast %45 : vector<2x8xf32> to vector<2x1x8xf32>
    %47 = arith.truncf %39 : vector<16x32xf32> to vector<16x32xbf16>
    %c0_16 = arith.constant 0 : index
    %c0_17 = arith.constant 0 : index
    %48 = vector.load %arg2[%c0_16, %c0_17] : memref<480x128xbf16, #tpu.memory_space<vmem>>, vector<32x128xbf16>
    %cst_18 = arith.constant dense<0.000000e+00> : vector<16x128xf32>
    %49 = tpu.matmul %47, %48, %cst_18 {dimension_numbers = #tpu.dot_dimension_numbers<[1], [0], [0], [1], [0, 0, 1, 1], [], []>} : vector<16x32xbf16>, vector<32x128xbf16>, vector<16x128xf32> -> vector<16x128xf32>
    %c0_19 = arith.constant 0 : index
    %c0_20 = arith.constant 0 : index
    %50 = vector.load %arg3[%c0_19, %c0_20] : memref<27x128xf32, #tpu.memory_space<vmem>>, vector<1x128xf32>
    %51 = vector.broadcast %50 : vector<1x128xf32> to vector<16x128xf32>
    %52 = arith.addf %49, %51 : vector<16x128xf32>
    %53 = vector.extract_strided_slice %52 {offsets = [0, 0], sizes = [16, 8], strides = [1, 1]} : vector<16x128xf32> to vector<16x8xf32>
    %54 = vector.shape_cast %53 : vector<16x8xf32> to vector<2x8x8xf32>
    %55 = vector.extract_strided_slice %52 {offsets = [0, 32], sizes = [16, 8], strides = [1, 1]} : vector<16x128xf32> to vector<16x8xf32>
    %56 = vector.shape_cast %55 : vector<16x8xf32> to vector<2x8x8xf32>
    %57 = vector.extract_strided_slice %52 {offsets = [0, 64], sizes = [16, 8], strides = [1, 1]} : vector<16x128xf32> to vector<16x8xf32>
    %58 = vector.shape_cast %57 : vector<16x8xf32> to vector<2x8x8xf32>
    "tpu.trace_start"() <{level = 10 : i32, message = "bqd,bkd->bqk"}> : () -> ()
    %cst_21 = arith.constant dense<0.000000e+00> : vector<2x8x8xf32>
    %59 = tpu.matmul %54, %56, %cst_21 {dimension_numbers = #tpu.dot_dimension_numbers<[2], [2], [1], [1], [0, 0, 0, 1, 1, 1], [0], [0]>} : vector<2x8x8xf32>, vector<2x8x8xf32>, vector<2x8x8xf32> -> vector<2x8x8xf32>
    "tpu.trace_stop"() : () -> ()
    %60 = vector.broadcast %46 : vector<2x1x8xf32> to vector<2x8x8xf32>
    %61 = arith.addf %59, %60 : vector<2x8x8xf32>
    %cst_22 = arith.constant dense<0xFF800000> : vector<2x8xf32>
    %62 = vector.multi_reduction <maximumf>, %61, %cst_22 [2] : vector<2x8x8xf32> to vector<2x8xf32>
    %63 = vector.shape_cast %62 : vector<2x8xf32> to vector<2x8x1xf32>
    %64 = vector.broadcast %63 : vector<2x8x1xf32> to vector<2x8x8xf32>
    %65 = arith.subf %61, %64 : vector<2x8x8xf32>
    %66 = math.exp %65 : vector<2x8x8xf32>
    %cst_23 = arith.constant dense<0.000000e+00> : vector<2x8xf32>
    %67 = vector.multi_reduction <add>, %66, %cst_23 [2] : vector<2x8x8xf32> to vector<2x8xf32>
    %68 = vector.shape_cast %67 : vector<2x8xf32> to vector<2x8x1xf32>
    %69 = tpu.reciprocal %68 {approx = true} : vector<2x8x1xf32> -> vector<2x8x1xf32>
    %70 = vector.broadcast %69 : vector<2x8x1xf32> to vector<2x8x8xf32>
    %71 = arith.mulf %66, %70 : vector<2x8x8xf32>
    "tpu.trace_start"() <{level = 10 : i32, message = "bqk,bkd->bqd"}> : () -> ()
    %cst_24 = arith.constant dense<0.000000e+00> : vector<2x8x8xf32>
    %72 = tpu.matmul %71, %58, %cst_24 {dimension_numbers = #tpu.dot_dimension_numbers<[2], [1], [1], [2], [0, 0, 0, 1, 1, 2], [0], [0]>} : vector<2x8x8xf32>, vector<2x8x8xf32>, vector<2x8x8xf32> -> vector<2x8x8xf32>
    "tpu.trace_stop"() : () -> ()
    %73 = vector.extract_strided_slice %52 {offsets = [0, 8], sizes = [16, 8], strides = [1, 1]} : vector<16x128xf32> to vector<16x8xf32>
    %74 = vector.shape_cast %73 : vector<16x8xf32> to vector<2x8x8xf32>
    %75 = vector.extract_strided_slice %52 {offsets = [0, 40], sizes = [16, 8], strides = [1, 1]} : vector<16x128xf32> to vector<16x8xf32>
    %76 = vector.shape_cast %75 : vector<16x8xf32> to vector<2x8x8xf32>
    %77 = vector.extract_strided_slice %52 {offsets = [0, 72], sizes = [16, 8], strides = [1, 1]} : vector<16x128xf32> to vector<16x8xf32>
    %78 = vector.shape_cast %77 : vector<16x8xf32> to vector<2x8x8xf32>
    "tpu.trace_start"() <{level = 10 : i32, message = "bqd,bkd->bqk"}> : () -> ()
    %cst_25 = arith.constant dense<0.000000e+00> : vector<2x8x8xf32>
    %79 = tpu.matmul %74, %76, %cst_25 {dimension_numbers = #tpu.dot_dimension_numbers<[2], [2], [1], [1], [0, 0, 0, 1, 1, 1], [0], [0]>} : vector<2x8x8xf32>, vector<2x8x8xf32>, vector<2x8x8xf32> -> vector<2x8x8xf32>
    "tpu.trace_stop"() : () -> ()
    %80 = vector.broadcast %46 : vector<2x1x8xf32> to vector<2x8x8xf32>
    %81 = arith.addf %79, %80 : vector<2x8x8xf32>
    %cst_26 = arith.constant dense<0xFF800000> : vector<2x8xf32>
    %82 = vector.multi_reduction <maximumf>, %81, %cst_26 [2] : vector<2x8x8xf32> to vector<2x8xf32>
    %83 = vector.shape_cast %82 : vector<2x8xf32> to vector<2x8x1xf32>
    %84 = vector.broadcast %83 : vector<2x8x1xf32> to vector<2x8x8xf32>
    %85 = arith.subf %81, %84 : vector<2x8x8xf32>
    %86 = math.exp %85 : vector<2x8x8xf32>
    %cst_27 = arith.constant dense<0.000000e+00> : vector<2x8xf32>
    %87 = vector.multi_reduction <add>, %86, %cst_27 [2] : vector<2x8x8xf32> to vector<2x8xf32>
    %88 = vector.shape_cast %87 : vector<2x8xf32> to vector<2x8x1xf32>
    %89 = tpu.reciprocal %88 {approx = true} : vector<2x8x1xf32> -> vector<2x8x1xf32>
    %90 = vector.broadcast %89 : vector<2x8x1xf32> to vector<2x8x8xf32>
    %91 = arith.mulf %86, %90 : vector<2x8x8xf32>
    "tpu.trace_start"() <{level = 10 : i32, message = "bqk,bkd->bqd"}> : () -> ()
    %cst_28 = arith.constant dense<0.000000e+00> : vector<2x8x8xf32>
    %92 = tpu.matmul %91, %78, %cst_28 {dimension_numbers = #tpu.dot_dimension_numbers<[2], [1], [1], [2], [0, 0, 0, 1, 1, 2], [0], [0]>} : vector<2x8x8xf32>, vector<2x8x8xf32>, vector<2x8x8xf32> -> vector<2x8x8xf32>
    "tpu.trace_stop"() : () -> ()
    %93 = vector.extract_strided_slice %52 {offsets = [0, 16], sizes = [16, 8], strides = [1, 1]} : vector<16x128xf32> to vector<16x8xf32>
    %94 = vector.shape_cast %93 : vector<16x8xf32> to vector<2x8x8xf32>
    %95 = vector.extract_strided_slice %52 {offsets = [0, 48], sizes = [16, 8], strides = [1, 1]} : vector<16x128xf32> to vector<16x8xf32>
    %96 = vector.shape_cast %95 : vector<16x8xf32> to vector<2x8x8xf32>
    %97 = vector.extract_strided_slice %52 {offsets = [0, 80], sizes = [16, 8], strides = [1, 1]} : vector<16x128xf32> to vector<16x8xf32>
    %98 = vector.shape_cast %97 : vector<16x8xf32> to vector<2x8x8xf32>
    "tpu.trace_start"() <{level = 10 : i32, message = "bqd,bkd->bqk"}> : () -> ()
    %cst_29 = arith.constant dense<0.000000e+00> : vector<2x8x8xf32>
    %99 = tpu.matmul %94, %96, %cst_29 {dimension_numbers = #tpu.dot_dimension_numbers<[2], [2], [1], [1], [0, 0, 0, 1, 1, 1], [0], [0]>} : vector<2x8x8xf32>, vector<2x8x8xf32>, vector<2x8x8xf32> -> vector<2x8x8xf32>
    "tpu.trace_stop"() : () -> ()
    %100 = vector.broadcast %46 : vector<2x1x8xf32> to vector<2x8x8xf32>
    %101 = arith.addf %99, %100 : vector<2x8x8xf32>
    %cst_30 = arith.constant dense<0xFF800000> : vector<2x8xf32>
    %102 = vector.multi_reduction <maximumf>, %101, %cst_30 [2] : vector<2x8x8xf32> to vector<2x8xf32>
    %103 = vector.shape_cast %102 : vector<2x8xf32> to vector<2x8x1xf32>
    %104 = vector.broadcast %103 : vector<2x8x1xf32> to vector<2x8x8xf32>
    %105 = arith.subf %101, %104 : vector<2x8x8xf32>
    %106 = math.exp %105 : vector<2x8x8xf32>
    %cst_31 = arith.constant dense<0.000000e+00> : vector<2x8xf32>
    %107 = vector.multi_reduction <add>, %106, %cst_31 [2] : vector<2x8x8xf32> to vector<2x8xf32>
    %108 = vector.shape_cast %107 : vector<2x8xf32> to vector<2x8x1xf32>
    %109 = tpu.reciprocal %108 {approx = true} : vector<2x8x1xf32> -> vector<2x8x1xf32>
    %110 = vector.broadcast %109 : vector<2x8x1xf32> to vector<2x8x8xf32>
    %111 = arith.mulf %106, %110 : vector<2x8x8xf32>
    "tpu.trace_start"() <{level = 10 : i32, message = "bqk,bkd->bqd"}> : () -> ()
    %cst_32 = arith.constant dense<0.000000e+00> : vector<2x8x8xf32>
    %112 = tpu.matmul %111, %98, %cst_32 {dimension_numbers = #tpu.dot_dimension_numbers<[2], [1], [1], [2], [0, 0, 0, 1, 1, 2], [0], [0]>} : vector<2x8x8xf32>, vector<2x8x8xf32>, vector<2x8x8xf32> -> vector<2x8x8xf32>
    "tpu.trace_stop"() : () -> ()
    %113 = vector.extract_strided_slice %52 {offsets = [0, 24], sizes = [16, 8], strides = [1, 1]} : vector<16x128xf32> to vector<16x8xf32>
    %114 = vector.shape_cast %113 : vector<16x8xf32> to vector<2x8x8xf32>
    %115 = vector.extract_strided_slice %52 {offsets = [0, 56], sizes = [16, 8], strides = [1, 1]} : vector<16x128xf32> to vector<16x8xf32>
    %116 = vector.shape_cast %115 : vector<16x8xf32> to vector<2x8x8xf32>
    %117 = vector.extract_strided_slice %52 {offsets = [0, 88], sizes = [16, 8], strides = [1, 1]} : vector<16x128xf32> to vector<16x8xf32>
    %118 = vector.shape_cast %117 : vector<16x8xf32> to vector<2x8x8xf32>
    "tpu.trace_start"() <{level = 10 : i32, message = "bqd,bkd->bqk"}> : () -> ()
    %cst_33 = arith.constant dense<0.000000e+00> : vector<2x8x8xf32>
    %119 = tpu.matmul %114, %116, %cst_33 {dimension_numbers = #tpu.dot_dimension_numbers<[2], [2], [1], [1], [0, 0, 0, 1, 1, 1], [0], [0]>} : vector<2x8x8xf32>, vector<2x8x8xf32>, vector<2x8x8xf32> -> vector<2x8x8xf32>
    "tpu.trace_stop"() : () -> ()
    %120 = vector.broadcast %46 : vector<2x1x8xf32> to vector<2x8x8xf32>
    %121 = arith.addf %119, %120 : vector<2x8x8xf32>
    %cst_34 = arith.constant dense<0xFF800000> : vector<2x8xf32>
    %122 = vector.multi_reduction <maximumf>, %121, %cst_34 [2] : vector<2x8x8xf32> to vector<2x8xf32>
    %123 = vector.shape_cast %122 : vector<2x8xf32> to vector<2x8x1xf32>
    %124 = vector.broadcast %123 : vector<2x8x1xf32> to vector<2x8x8xf32>
    %125 = arith.subf %121, %124 : vector<2x8x8xf32>
    %126 = math.exp %125 : vector<2x8x8xf32>
    %cst_35 = arith.constant dense<0.000000e+00> : vector<2x8xf32>
    %127 = vector.multi_reduction <add>, %126, %cst_35 [2] : vector<2x8x8xf32> to vector<2x8xf32>
    %128 = vector.shape_cast %127 : vector<2x8xf32> to vector<2x8x1xf32>
    %129 = tpu.reciprocal %128 {approx = true} : vector<2x8x1xf32> -> vector<2x8x1xf32>
    %130 = vector.broadcast %129 : vector<2x8x1xf32> to vector<2x8x8xf32>
    %131 = arith.mulf %126, %130 : vector<2x8x8xf32>
    "tpu.trace_start"() <{level = 10 : i32, message = "bqk,bkd->bqd"}> : () -> ()
    %cst_36 = arith.constant dense<0.000000e+00> : vector<2x8x8xf32>
    %132 = tpu.matmul %131, %118, %cst_36 {dimension_numbers = #tpu.dot_dimension_numbers<[2], [1], [1], [2], [0, 0, 0, 1, 1, 2], [0], [0]>} : vector<2x8x8xf32>, vector<2x8x8xf32>, vector<2x8x8xf32> -> vector<2x8x8xf32>
    "tpu.trace_stop"() : () -> ()
    %133 = tpu.concatenate %72, %92, %112, %132 in 2 : vector<2x8x8xf32>, vector<2x8x8xf32>, vector<2x8x8xf32>, vector<2x8x8xf32> -> vector<2x8x32xf32>
    %134 = vector.shape_cast %133 : vector<2x8x32xf32> to vector<16x32xf32>
    %135 = arith.truncf %134 : vector<16x32xf32> to vector<16x32xbf16>
    %c32 = arith.constant 32 : index
    %c0_37 = arith.constant 0 : index
    %136 = vector.load %arg2[%c32, %c0_37] : memref<480x128xbf16, #tpu.memory_space<vmem>>, vector<32x32xbf16>
    %cst_38 = arith.constant dense<0.000000e+00> : vector<16x32xf32>
    %137 = tpu.matmul %135, %136, %cst_38 {dimension_numbers = #tpu.dot_dimension_numbers<[1], [0], [0], [1], [0, 0, 1, 1], [], []>} : vector<16x32xbf16>, vector<32x32xbf16>, vector<16x32xf32> -> vector<16x32xf32>
    %c1 = arith.constant 1 : index
    %c0_39 = arith.constant 0 : index
    %138 = vector.load %arg3[%c1, %c0_39] : memref<27x128xf32, #tpu.memory_space<vmem>>, vector<1x32xf32>
    %139 = vector.broadcast %138 : vector<1x32xf32> to vector<16x32xf32>
    %140 = arith.addf %137, %139 : vector<16x32xf32>
    %141 = arith.addf %39, %140 : vector<16x32xf32>
    %c2 = arith.constant 2 : index
    %c0_40 = arith.constant 0 : index
    %142 = vector.load %arg3[%c2, %c0_40] : memref<27x128xf32, #tpu.memory_space<vmem>>, vector<1x32xf32>
    %c3 = arith.constant 3 : index
    %c0_41 = arith.constant 0 : index
    %143 = vector.load %arg3[%c3, %c0_41] : memref<27x128xf32, #tpu.memory_space<vmem>>, vector<1x32xf32>
    %cst_42 = arith.constant dense<0.000000e+00> : vector<16xf32>
    %144 = vector.multi_reduction <add>, %141, %cst_42 [1] : vector<16x32xf32> to vector<16xf32>
    %145 = vector.shape_cast %144 : vector<16xf32> to vector<16x1xf32>
    %cst_43 = arith.constant 3.200000e+01 : f32
    %146 = vector.broadcast %cst_43 : f32 to vector<16x1xf32>
    %147 = arith.divf %145, %146 : vector<16x1xf32>
    %148 = vector.broadcast %147 : vector<16x1xf32> to vector<16x32xf32>
    %149 = arith.subf %141, %148 : vector<16x32xf32>
    %150 = arith.mulf %149, %149 : vector<16x32xf32>
    %cst_44 = arith.constant dense<0.000000e+00> : vector<16xf32>
    %151 = vector.multi_reduction <add>, %150, %cst_44 [1] : vector<16x32xf32> to vector<16xf32>
    %152 = vector.shape_cast %151 : vector<16xf32> to vector<16x1xf32>
    %cst_45 = arith.constant 3.200000e+01 : f32
    %153 = vector.broadcast %cst_45 : f32 to vector<16x1xf32>
    %154 = arith.divf %152, %153 : vector<16x1xf32>
    %155 = vector.broadcast %147 : vector<16x1xf32> to vector<16x32xf32>
    %156 = arith.subf %141, %155 : vector<16x32xf32>
    %cst_46 = arith.constant 9.99999996E-13 : f32
    %157 = vector.broadcast %cst_46 : f32 to vector<16x1xf32>
    %158 = arith.addf %154, %157 : vector<16x1xf32>
    %159 = math.rsqrt %158 : vector<16x1xf32>
    %160 = vector.broadcast %159 : vector<16x1xf32> to vector<16x32xf32>
    %161 = arith.mulf %156, %160 : vector<16x32xf32>
    %162 = vector.broadcast %142 : vector<1x32xf32> to vector<16x32xf32>
    %163 = arith.mulf %161, %162 : vector<16x32xf32>
    %164 = vector.broadcast %143 : vector<1x32xf32> to vector<16x32xf32>
    %165 = arith.addf %163, %164 : vector<16x32xf32>
    %166 = arith.truncf %165 : vector<16x32xf32> to vector<16x32xbf16>
    %c64 = arith.constant 64 : index
    %c0_47 = arith.constant 0 : index
    %167 = vector.load %arg2[%c64, %c0_47] : memref<480x128xbf16, #tpu.memory_space<vmem>>, vector<32x64xbf16>
    %cst_48 = arith.constant dense<0.000000e+00> : vector<16x64xf32>
    %168 = tpu.matmul %166, %167, %cst_48 {dimension_numbers = #tpu.dot_dimension_numbers<[1], [0], [0], [1], [0, 0, 1, 1], [], []>} : vector<16x32xbf16>, vector<32x64xbf16>, vector<16x64xf32> -> vector<16x64xf32>
    %c4 = arith.constant 4 : index
    %c0_49 = arith.constant 0 : index
    %169 = vector.load %arg3[%c4, %c0_49] : memref<27x128xf32, #tpu.memory_space<vmem>>, vector<1x64xf32>
    %170 = vector.broadcast %169 : vector<1x64xf32> to vector<16x64xf32>
    %171 = arith.addf %168, %170 : vector<16x64xf32>
    %cst_50 = arith.constant 5.000000e-01 : f32
    %172 = vector.broadcast %cst_50 : f32 to vector<16x64xf32>
    %173 = arith.mulf %172, %171 : vector<16x64xf32>
    %cst_51 = arith.constant 0.707106769 : f32
    %174 = vector.broadcast %cst_51 : f32 to vector<16x64xf32>
    %175 = arith.mulf %171, %174 : vector<16x64xf32>
    %176 = math.absf %175 : vector<16x64xf32>
    %cst_52 = arith.constant 0.327591091 : f32
    %177 = vector.broadcast %cst_52 : f32 to vector<16x64xf32>
    %178 = arith.mulf %177, %176 : vector<16x64xf32>
    %cst_53 = arith.constant 1.000000e+00 : f32
    %179 = vector.broadcast %cst_53 : f32 to vector<16x64xf32>
    %180 = arith.addf %179, %178 : vector<16x64xf32>
    %181 = tpu.reciprocal %180 {approx = true} : vector<16x64xf32> -> vector<16x64xf32>
    %cst_54 = arith.constant 1.06140542 : f32
    %182 = vector.broadcast %cst_54 : f32 to vector<16x64xf32>
    %183 = arith.mulf %182, %181 : vector<16x64xf32>
    %cst_55 = arith.constant -1.45315206 : f32
    %184 = vector.broadcast %cst_55 : f32 to vector<16x64xf32>
    %185 = arith.addf %183, %184 : vector<16x64xf32>
    %186 = arith.mulf %185, %181 : vector<16x64xf32>
    %cst_56 = arith.constant 1.42141378 : f32
    %187 = vector.broadcast %cst_56 : f32 to vector<16x64xf32>
    %188 = arith.addf %186, %187 : vector<16x64xf32>
    %189 = arith.mulf %188, %181 : vector<16x64xf32>
    %cst_57 = arith.constant -0.284496725 : f32
    %190 = vector.broadcast %cst_57 : f32 to vector<16x64xf32>
    %191 = arith.addf %189, %190 : vector<16x64xf32>
    %192 = arith.mulf %191, %181 : vector<16x64xf32>
    %cst_58 = arith.constant 0.254829586 : f32
    %193 = vector.broadcast %cst_58 : f32 to vector<16x64xf32>
    %194 = arith.addf %192, %193 : vector<16x64xf32>
    %195 = arith.mulf %194, %181 : vector<16x64xf32>
    %cst_59 = arith.constant 0.000000e+00 : f32
    %196 = vector.broadcast %cst_59 : f32 to vector<16x64xf32>
    %197 = arith.subf %196, %176 : vector<16x64xf32>
    %198 = arith.mulf %197, %176 : vector<16x64xf32>
    %199 = math.exp %198 : vector<16x64xf32>
    %200 = arith.mulf %195, %199 : vector<16x64xf32>
    %cst_60 = arith.constant 1.000000e+00 : f32
    %201 = vector.broadcast %cst_60 : f32 to vector<16x64xf32>
    %202 = arith.subf %201, %200 : vector<16x64xf32>
    %cst_61 = arith.constant 0.000000e+00 : f32
    %203 = vector.broadcast %cst_61 : f32 to vector<16x64xf32>
    %204 = arith.cmpf oge, %175, %203 : vector<16x64xf32>
    %cst_62 = arith.constant 0.000000e+00 : f32
    %205 = vector.broadcast %cst_62 : f32 to vector<16x64xf32>
    %206 = arith.subf %205, %202 : vector<16x64xf32>
    %207 = arith.select %204, %202, %206 : vector<16x64xi1>, vector<16x64xf32>
    %cst_63 = arith.constant 1.000000e+00 : f32
    %208 = vector.broadcast %cst_63 : f32 to vector<16x64xf32>
    %209 = arith.addf %208, %207 : vector<16x64xf32>
    %210 = arith.mulf %173, %209 : vector<16x64xf32>
    %211 = arith.truncf %210 : vector<16x64xf32> to vector<16x64xbf16>
    %c96 = arith.constant 96 : index
    %c0_64 = arith.constant 0 : index
    %212 = vector.load %arg2[%c96, %c0_64] : memref<480x128xbf16, #tpu.memory_space<vmem>>, vector<64x32xbf16>
    %cst_65 = arith.constant dense<0.000000e+00> : vector<16x32xf32>
    %213 = tpu.matmul %211, %212, %cst_65 {dimension_numbers = #tpu.dot_dimension_numbers<[1], [0], [0], [1], [0, 0, 1, 1], [], []>} : vector<16x64xbf16>, vector<64x32xbf16>, vector<16x32xf32> -> vector<16x32xf32>
    %c5 = arith.constant 5 : index
    %c0_66 = arith.constant 0 : index
    %214 = vector.load %arg3[%c5, %c0_66] : memref<27x128xf32, #tpu.memory_space<vmem>>, vector<1x32xf32>
    %215 = vector.broadcast %214 : vector<1x32xf32> to vector<16x32xf32>
    %216 = arith.addf %213, %215 : vector<16x32xf32>
    %217 = arith.addf %165, %216 : vector<16x32xf32>
    %c6 = arith.constant 6 : index
    %c0_67 = arith.constant 0 : index
    %218 = vector.load %arg3[%c6, %c0_67] : memref<27x128xf32, #tpu.memory_space<vmem>>, vector<1x32xf32>
    %c7 = arith.constant 7 : index
    %c0_68 = arith.constant 0 : index
    %219 = vector.load %arg3[%c7, %c0_68] : memref<27x128xf32, #tpu.memory_space<vmem>>, vector<1x32xf32>
    %cst_69 = arith.constant dense<0.000000e+00> : vector<16xf32>
    %220 = vector.multi_reduction <add>, %217, %cst_69 [1] : vector<16x32xf32> to vector<16xf32>
    %221 = vector.shape_cast %220 : vector<16xf32> to vector<16x1xf32>
    %cst_70 = arith.constant 3.200000e+01 : f32
    %222 = vector.broadcast %cst_70 : f32 to vector<16x1xf32>
    %223 = arith.divf %221, %222 : vector<16x1xf32>
    %224 = vector.broadcast %223 : vector<16x1xf32> to vector<16x32xf32>
    %225 = arith.subf %217, %224 : vector<16x32xf32>
    %226 = arith.mulf %225, %225 : vector<16x32xf32>
    %cst_71 = arith.constant dense<0.000000e+00> : vector<16xf32>
    %227 = vector.multi_reduction <add>, %226, %cst_71 [1] : vector<16x32xf32> to vector<16xf32>
    %228 = vector.shape_cast %227 : vector<16xf32> to vector<16x1xf32>
    %cst_72 = arith.constant 3.200000e+01 : f32
    %229 = vector.broadcast %cst_72 : f32 to vector<16x1xf32>
    %230 = arith.divf %228, %229 : vector<16x1xf32>
    %231 = vector.broadcast %223 : vector<16x1xf32> to vector<16x32xf32>
    %232 = arith.subf %217, %231 : vector<16x32xf32>
    %cst_73 = arith.constant 9.99999996E-13 : f32
    %233 = vector.broadcast %cst_73 : f32 to vector<16x1xf32>
    %234 = arith.addf %230, %233 : vector<16x1xf32>
    %235 = math.rsqrt %234 : vector<16x1xf32>
    %236 = vector.broadcast %235 : vector<16x1xf32> to vector<16x32xf32>
    %237 = arith.mulf %232, %236 : vector<16x32xf32>
    %238 = vector.broadcast %218 : vector<1x32xf32> to vector<16x32xf32>
    %239 = arith.mulf %237, %238 : vector<16x32xf32>
    %240 = vector.broadcast %219 : vector<1x32xf32> to vector<16x32xf32>
    %241 = arith.addf %239, %240 : vector<16x32xf32>
    %242 = arith.truncf %241 : vector<16x32xf32> to vector<16x32xbf16>
    %c160 = arith.constant 160 : index
    %c0_74 = arith.constant 0 : index
    %243 = vector.load %arg2[%c160, %c0_74] : memref<480x128xbf16, #tpu.memory_space<vmem>>, vector<32x128xbf16>
    %cst_75 = arith.constant dense<0.000000e+00> : vector<16x128xf32>
    %244 = tpu.matmul %242, %243, %cst_75 {dimension_numbers = #tpu.dot_dimension_numbers<[1], [0], [0], [1], [0, 0, 1, 1], [], []>} : vector<16x32xbf16>, vector<32x128xbf16>, vector<16x128xf32> -> vector<16x128xf32>
    %c8 = arith.constant 8 : index
    %c0_76 = arith.constant 0 : index
    %245 = vector.load %arg3[%c8, %c0_76] : memref<27x128xf32, #tpu.memory_space<vmem>>, vector<1x128xf32>
    %246 = vector.broadcast %245 : vector<1x128xf32> to vector<16x128xf32>
    %247 = arith.addf %244, %246 : vector<16x128xf32>
    %248 = vector.extract_strided_slice %247 {offsets = [0, 0], sizes = [16, 8], strides = [1, 1]} : vector<16x128xf32> to vector<16x8xf32>
    %249 = vector.shape_cast %248 : vector<16x8xf32> to vector<2x8x8xf32>
    %250 = vector.extract_strided_slice %247 {offsets = [0, 32], sizes = [16, 8], strides = [1, 1]} : vector<16x128xf32> to vector<16x8xf32>
    %251 = vector.shape_cast %250 : vector<16x8xf32> to vector<2x8x8xf32>
    %252 = vector.extract_strided_slice %247 {offsets = [0, 64], sizes = [16, 8], strides = [1, 1]} : vector<16x128xf32> to vector<16x8xf32>
    %253 = vector.shape_cast %252 : vector<16x8xf32> to vector<2x8x8xf32>
    "tpu.trace_start"() <{level = 10 : i32, message = "bqd,bkd->bqk"}> : () -> ()
    %cst_77 = arith.constant dense<0.000000e+00> : vector<2x8x8xf32>
    %254 = tpu.matmul %249, %251, %cst_77 {dimension_numbers = #tpu.dot_dimension_numbers<[2], [2], [1], [1], [0, 0, 0, 1, 1, 1], [0], [0]>} : vector<2x8x8xf32>, vector<2x8x8xf32>, vector<2x8x8xf32> -> vector<2x8x8xf32>
    "tpu.trace_stop"() : () -> ()
    %255 = vector.broadcast %46 : vector<2x1x8xf32> to vector<2x8x8xf32>
    %256 = arith.addf %254, %255 : vector<2x8x8xf32>
    %cst_78 = arith.constant dense<0xFF800000> : vector<2x8xf32>
    %257 = vector.multi_reduction <maximumf>, %256, %cst_78 [2] : vector<2x8x8xf32> to vector<2x8xf32>
    %258 = vector.shape_cast %257 : vector<2x8xf32> to vector<2x8x1xf32>
    %259 = vector.broadcast %258 : vector<2x8x1xf32> to vector<2x8x8xf32>
    %260 = arith.subf %256, %259 : vector<2x8x8xf32>
    %261 = math.exp %260 : vector<2x8x8xf32>
    %cst_79 = arith.constant dense<0.000000e+00> : vector<2x8xf32>
    %262 = vector.multi_reduction <add>, %261, %cst_79 [2] : vector<2x8x8xf32> to vector<2x8xf32>
    %263 = vector.shape_cast %262 : vector<2x8xf32> to vector<2x8x1xf32>
    %264 = tpu.reciprocal %263 {approx = true} : vector<2x8x1xf32> -> vector<2x8x1xf32>
    %265 = vector.broadcast %264 : vector<2x8x1xf32> to vector<2x8x8xf32>
    %266 = arith.mulf %261, %265 : vector<2x8x8xf32>
    "tpu.trace_start"() <{level = 10 : i32, message = "bqk,bkd->bqd"}> : () -> ()
    %cst_80 = arith.constant dense<0.000000e+00> : vector<2x8x8xf32>
    %267 = tpu.matmul %266, %253, %cst_80 {dimension_numbers = #tpu.dot_dimension_numbers<[2], [1], [1], [2], [0, 0, 0, 1, 1, 2], [0], [0]>} : vector<2x8x8xf32>, vector<2x8x8xf32>, vector<2x8x8xf32> -> vector<2x8x8xf32>
    "tpu.trace_stop"() : () -> ()
    %268 = vector.extract_strided_slice %247 {offsets = [0, 8], sizes = [16, 8], strides = [1, 1]} : vector<16x128xf32> to vector<16x8xf32>
    %269 = vector.shape_cast %268 : vector<16x8xf32> to vector<2x8x8xf32>
    %270 = vector.extract_strided_slice %247 {offsets = [0, 40], sizes = [16, 8], strides = [1, 1]} : vector<16x128xf32> to vector<16x8xf32>
    %271 = vector.shape_cast %270 : vector<16x8xf32> to vector<2x8x8xf32>
    %272 = vector.extract_strided_slice %247 {offsets = [0, 72], sizes = [16, 8], strides = [1, 1]} : vector<16x128xf32> to vector<16x8xf32>
    %273 = vector.shape_cast %272 : vector<16x8xf32> to vector<2x8x8xf32>
    "tpu.trace_start"() <{level = 10 : i32, message = "bqd,bkd->bqk"}> : () -> ()
    %cst_81 = arith.constant dense<0.000000e+00> : vector<2x8x8xf32>
    %274 = tpu.matmul %269, %271, %cst_81 {dimension_numbers = #tpu.dot_dimension_numbers<[2], [2], [1], [1], [0, 0, 0, 1, 1, 1], [0], [0]>} : vector<2x8x8xf32>, vector<2x8x8xf32>, vector<2x8x8xf32> -> vector<2x8x8xf32>
    "tpu.trace_stop"() : () -> ()
    %275 = vector.broadcast %46 : vector<2x1x8xf32> to vector<2x8x8xf32>
    %276 = arith.addf %274, %275 : vector<2x8x8xf32>
    %cst_82 = arith.constant dense<0xFF800000> : vector<2x8xf32>
    %277 = vector.multi_reduction <maximumf>, %276, %cst_82 [2] : vector<2x8x8xf32> to vector<2x8xf32>
    %278 = vector.shape_cast %277 : vector<2x8xf32> to vector<2x8x1xf32>
    %279 = vector.broadcast %278 : vector<2x8x1xf32> to vector<2x8x8xf32>
    %280 = arith.subf %276, %279 : vector<2x8x8xf32>
    %281 = math.exp %280 : vector<2x8x8xf32>
    %cst_83 = arith.constant dense<0.000000e+00> : vector<2x8xf32>
    %282 = vector.multi_reduction <add>, %281, %cst_83 [2] : vector<2x8x8xf32> to vector<2x8xf32>
    %283 = vector.shape_cast %282 : vector<2x8xf32> to vector<2x8x1xf32>
    %284 = tpu.reciprocal %283 {approx = true} : vector<2x8x1xf32> -> vector<2x8x1xf32>
    %285 = vector.broadcast %284 : vector<2x8x1xf32> to vector<2x8x8xf32>
    %286 = arith.mulf %281, %285 : vector<2x8x8xf32>
    "tpu.trace_start"() <{level = 10 : i32, message = "bqk,bkd->bqd"}> : () -> ()
    %cst_84 = arith.constant dense<0.000000e+00> : vector<2x8x8xf32>
    %287 = tpu.matmul %286, %273, %cst_84 {dimension_numbers = #tpu.dot_dimension_numbers<[2], [1], [1], [2], [0, 0, 0, 1, 1, 2], [0], [0]>} : vector<2x8x8xf32>, vector<2x8x8xf32>, vector<2x8x8xf32> -> vector<2x8x8xf32>
    "tpu.trace_stop"() : () -> ()
    %288 = vector.extract_strided_slice %247 {offsets = [0, 16], sizes = [16, 8], strides = [1, 1]} : vector<16x128xf32> to vector<16x8xf32>
    %289 = vector.shape_cast %288 : vector<16x8xf32> to vector<2x8x8xf32>
    %290 = vector.extract_strided_slice %247 {offsets = [0, 48], sizes = [16, 8], strides = [1, 1]} : vector<16x128xf32> to vector<16x8xf32>
    %291 = vector.shape_cast %290 : vector<16x8xf32> to vector<2x8x8xf32>
    %292 = vector.extract_strided_slice %247 {offsets = [0, 80], sizes = [16, 8], strides = [1, 1]} : vector<16x128xf32> to vector<16x8xf32>
    %293 = vector.shape_cast %292 : vector<16x8xf32> to vector<2x8x8xf32>
    "tpu.trace_start"() <{level = 10 : i32, message = "bqd,bkd->bqk"}> : () -> ()
    %cst_85 = arith.constant dense<0.000000e+00> : vector<2x8x8xf32>
    %294 = tpu.matmul %289, %291, %cst_85 {dimension_numbers = #tpu.dot_dimension_numbers<[2], [2], [1], [1], [0, 0, 0, 1, 1, 1], [0], [0]>} : vector<2x8x8xf32>, vector<2x8x8xf32>, vector<2x8x8xf32> -> vector<2x8x8xf32>
    "tpu.trace_stop"() : () -> ()
    %295 = vector.broadcast %46 : vector<2x1x8xf32> to vector<2x8x8xf32>
    %296 = arith.addf %294, %295 : vector<2x8x8xf32>
    %cst_86 = arith.constant dense<0xFF800000> : vector<2x8xf32>
    %297 = vector.multi_reduction <maximumf>, %296, %cst_86 [2] : vector<2x8x8xf32> to vector<2x8xf32>
    %298 = vector.shape_cast %297 : vector<2x8xf32> to vector<2x8x1xf32>
    %299 = vector.broadcast %298 : vector<2x8x1xf32> to vector<2x8x8xf32>
    %300 = arith.subf %296, %299 : vector<2x8x8xf32>
    %301 = math.exp %300 : vector<2x8x8xf32>
    %cst_87 = arith.constant dense<0.000000e+00> : vector<2x8xf32>
    %302 = vector.multi_reduction <add>, %301, %cst_87 [2] : vector<2x8x8xf32> to vector<2x8xf32>
    %303 = vector.shape_cast %302 : vector<2x8xf32> to vector<2x8x1xf32>
    %304 = tpu.reciprocal %303 {approx = true} : vector<2x8x1xf32> -> vector<2x8x1xf32>
    %305 = vector.broadcast %304 : vector<2x8x1xf32> to vector<2x8x8xf32>
    %306 = arith.mulf %301, %305 : vector<2x8x8xf32>
    "tpu.trace_start"() <{level = 10 : i32, message = "bqk,bkd->bqd"}> : () -> ()
    %cst_88 = arith.constant dense<0.000000e+00> : vector<2x8x8xf32>
    %307 = tpu.matmul %306, %293, %cst_88 {dimension_numbers = #tpu.dot_dimension_numbers<[2], [1], [1], [2], [0, 0, 0, 1, 1, 2], [0], [0]>} : vector<2x8x8xf32>, vector<2x8x8xf32>, vector<2x8x8xf32> -> vector<2x8x8xf32>
    "tpu.trace_stop"() : () -> ()
    %308 = vector.extract_strided_slice %247 {offsets = [0, 24], sizes = [16, 8], strides = [1, 1]} : vector<16x128xf32> to vector<16x8xf32>
    %309 = vector.shape_cast %308 : vector<16x8xf32> to vector<2x8x8xf32>
    %310 = vector.extract_strided_slice %247 {offsets = [0, 56], sizes = [16, 8], strides = [1, 1]} : vector<16x128xf32> to vector<16x8xf32>
    %311 = vector.shape_cast %310 : vector<16x8xf32> to vector<2x8x8xf32>
    %312 = vector.extract_strided_slice %247 {offsets = [0, 88], sizes = [16, 8], strides = [1, 1]} : vector<16x128xf32> to vector<16x8xf32>
    %313 = vector.shape_cast %312 : vector<16x8xf32> to vector<2x8x8xf32>
    "tpu.trace_start"() <{level = 10 : i32, message = "bqd,bkd->bqk"}> : () -> ()
    %cst_89 = arith.constant dense<0.000000e+00> : vector<2x8x8xf32>
    %314 = tpu.matmul %309, %311, %cst_89 {dimension_numbers = #tpu.dot_dimension_numbers<[2], [2], [1], [1], [0, 0, 0, 1, 1, 1], [0], [0]>} : vector<2x8x8xf32>, vector<2x8x8xf32>, vector<2x8x8xf32> -> vector<2x8x8xf32>
    "tpu.trace_stop"() : () -> ()
    %315 = vector.broadcast %46 : vector<2x1x8xf32> to vector<2x8x8xf32>
    %316 = arith.addf %314, %315 : vector<2x8x8xf32>
    %cst_90 = arith.constant dense<0xFF800000> : vector<2x8xf32>
    %317 = vector.multi_reduction <maximumf>, %316, %cst_90 [2] : vector<2x8x8xf32> to vector<2x8xf32>
    %318 = vector.shape_cast %317 : vector<2x8xf32> to vector<2x8x1xf32>
    %319 = vector.broadcast %318 : vector<2x8x1xf32> to vector<2x8x8xf32>
    %320 = arith.subf %316, %319 : vector<2x8x8xf32>
    %321 = math.exp %320 : vector<2x8x8xf32>
    %cst_91 = arith.constant dense<0.000000e+00> : vector<2x8xf32>
    %322 = vector.multi_reduction <add>, %321, %cst_91 [2] : vector<2x8x8xf32> to vector<2x8xf32>
    %323 = vector.shape_cast %322 : vector<2x8xf32> to vector<2x8x1xf32>
    %324 = tpu.reciprocal %323 {approx = true} : vector<2x8x1xf32> -> vector<2x8x1xf32>
    %325 = vector.broadcast %324 : vector<2x8x1xf32> to vector<2x8x8xf32>
    %326 = arith.mulf %321, %325 : vector<2x8x8xf32>
    "tpu.trace_start"() <{level = 10 : i32, message = "bqk,bkd->bqd"}> : () -> ()
    %cst_92 = arith.constant dense<0.000000e+00> : vector<2x8x8xf32>
    %327 = tpu.matmul %326, %313, %cst_92 {dimension_numbers = #tpu.dot_dimension_numbers<[2], [1], [1], [2], [0, 0, 0, 1, 1, 2], [0], [0]>} : vector<2x8x8xf32>, vector<2x8x8xf32>, vector<2x8x8xf32> -> vector<2x8x8xf32>
    "tpu.trace_stop"() : () -> ()
    %328 = tpu.concatenate %267, %287, %307, %327 in 2 : vector<2x8x8xf32>, vector<2x8x8xf32>, vector<2x8x8xf32>, vector<2x8x8xf32> -> vector<2x8x32xf32>
    %329 = vector.shape_cast %328 : vector<2x8x32xf32> to vector<16x32xf32>
    %330 = arith.truncf %329 : vector<16x32xf32> to vector<16x32xbf16>
    %c192 = arith.constant 192 : index
    %c0_93 = arith.constant 0 : index
    %331 = vector.load %arg2[%c192, %c0_93] : memref<480x128xbf16, #tpu.memory_space<vmem>>, vector<32x32xbf16>
    %cst_94 = arith.constant dense<0.000000e+00> : vector<16x32xf32>
    %332 = tpu.matmul %330, %331, %cst_94 {dimension_numbers = #tpu.dot_dimension_numbers<[1], [0], [0], [1], [0, 0, 1, 1], [], []>} : vector<16x32xbf16>, vector<32x32xbf16>, vector<16x32xf32> -> vector<16x32xf32>
    %c9 = arith.constant 9 : index
    %c0_95 = arith.constant 0 : index
    %333 = vector.load %arg3[%c9, %c0_95] : memref<27x128xf32, #tpu.memory_space<vmem>>, vector<1x32xf32>
    %334 = vector.broadcast %333 : vector<1x32xf32> to vector<16x32xf32>
    %335 = arith.addf %332, %334 : vector<16x32xf32>
    %336 = arith.addf %241, %335 : vector<16x32xf32>
    %c10 = arith.constant 10 : index
    %c0_96 = arith.constant 0 : index
    %337 = vector.load %arg3[%c10, %c0_96] : memref<27x128xf32, #tpu.memory_space<vmem>>, vector<1x32xf32>
    %c11 = arith.constant 11 : index
    %c0_97 = arith.constant 0 : index
    %338 = vector.load %arg3[%c11, %c0_97] : memref<27x128xf32, #tpu.memory_space<vmem>>, vector<1x32xf32>
    %cst_98 = arith.constant dense<0.000000e+00> : vector<16xf32>
    %339 = vector.multi_reduction <add>, %336, %cst_98 [1] : vector<16x32xf32> to vector<16xf32>
    %340 = vector.shape_cast %339 : vector<16xf32> to vector<16x1xf32>
    %cst_99 = arith.constant 3.200000e+01 : f32
    %341 = vector.broadcast %cst_99 : f32 to vector<16x1xf32>
    %342 = arith.divf %340, %341 : vector<16x1xf32>
    %343 = vector.broadcast %342 : vector<16x1xf32> to vector<16x32xf32>
    %344 = arith.subf %336, %343 : vector<16x32xf32>
    %345 = arith.mulf %344, %344 : vector<16x32xf32>
    %cst_100 = arith.constant dense<0.000000e+00> : vector<16xf32>
    %346 = vector.multi_reduction <add>, %345, %cst_100 [1] : vector<16x32xf32> to vector<16xf32>
    %347 = vector.shape_cast %346 : vector<16xf32> to vector<16x1xf32>
    %cst_101 = arith.constant 3.200000e+01 : f32
    %348 = vector.broadcast %cst_101 : f32 to vector<16x1xf32>
    %349 = arith.divf %347, %348 : vector<16x1xf32>
    %350 = vector.broadcast %342 : vector<16x1xf32> to vector<16x32xf32>
    %351 = arith.subf %336, %350 : vector<16x32xf32>
    %cst_102 = arith.constant 9.99999996E-13 : f32
    %352 = vector.broadcast %cst_102 : f32 to vector<16x1xf32>
    %353 = arith.addf %349, %352 : vector<16x1xf32>
    %354 = math.rsqrt %353 : vector<16x1xf32>
    %355 = vector.broadcast %354 : vector<16x1xf32> to vector<16x32xf32>
    %356 = arith.mulf %351, %355 : vector<16x32xf32>
    %357 = vector.broadcast %337 : vector<1x32xf32> to vector<16x32xf32>
    %358 = arith.mulf %356, %357 : vector<16x32xf32>
    %359 = vector.broadcast %338 : vector<1x32xf32> to vector<16x32xf32>
    %360 = arith.addf %358, %359 : vector<16x32xf32>
    %361 = arith.truncf %360 : vector<16x32xf32> to vector<16x32xbf16>
    %c224 = arith.constant 224 : index
    %c0_103 = arith.constant 0 : index
    %362 = vector.load %arg2[%c224, %c0_103] : memref<480x128xbf16, #tpu.memory_space<vmem>>, vector<32x64xbf16>
    %cst_104 = arith.constant dense<0.000000e+00> : vector<16x64xf32>
    %363 = tpu.matmul %361, %362, %cst_104 {dimension_numbers = #tpu.dot_dimension_numbers<[1], [0], [0], [1], [0, 0, 1, 1], [], []>} : vector<16x32xbf16>, vector<32x64xbf16>, vector<16x64xf32> -> vector<16x64xf32>
    %c12 = arith.constant 12 : index
    %c0_105 = arith.constant 0 : index
    %364 = vector.load %arg3[%c12, %c0_105] : memref<27x128xf32, #tpu.memory_space<vmem>>, vector<1x64xf32>
    %365 = vector.broadcast %364 : vector<1x64xf32> to vector<16x64xf32>
    %366 = arith.addf %363, %365 : vector<16x64xf32>
    %cst_106 = arith.constant 5.000000e-01 : f32
    %367 = vector.broadcast %cst_106 : f32 to vector<16x64xf32>
    %368 = arith.mulf %367, %366 : vector<16x64xf32>
    %cst_107 = arith.constant 0.707106769 : f32
    %369 = vector.broadcast %cst_107 : f32 to vector<16x64xf32>
    %370 = arith.mulf %366, %369 : vector<16x64xf32>
    %371 = math.absf %370 : vector<16x64xf32>
    %cst_108 = arith.constant 0.327591091 : f32
    %372 = vector.broadcast %cst_108 : f32 to vector<16x64xf32>
    %373 = arith.mulf %372, %371 : vector<16x64xf32>
    %cst_109 = arith.constant 1.000000e+00 : f32
    %374 = vector.broadcast %cst_109 : f32 to vector<16x64xf32>
    %375 = arith.addf %374, %373 : vector<16x64xf32>
    %376 = tpu.reciprocal %375 {approx = true} : vector<16x64xf32> -> vector<16x64xf32>
    %cst_110 = arith.constant 1.06140542 : f32
    %377 = vector.broadcast %cst_110 : f32 to vector<16x64xf32>
    %378 = arith.mulf %377, %376 : vector<16x64xf32>
    %cst_111 = arith.constant -1.45315206 : f32
    %379 = vector.broadcast %cst_111 : f32 to vector<16x64xf32>
    %380 = arith.addf %378, %379 : vector<16x64xf32>
    %381 = arith.mulf %380, %376 : vector<16x64xf32>
    %cst_112 = arith.constant 1.42141378 : f32
    %382 = vector.broadcast %cst_112 : f32 to vector<16x64xf32>
    %383 = arith.addf %381, %382 : vector<16x64xf32>
    %384 = arith.mulf %383, %376 : vector<16x64xf32>
    %cst_113 = arith.constant -0.284496725 : f32
    %385 = vector.broadcast %cst_113 : f32 to vector<16x64xf32>
    %386 = arith.addf %384, %385 : vector<16x64xf32>
    %387 = arith.mulf %386, %376 : vector<16x64xf32>
    %cst_114 = arith.constant 0.254829586 : f32
    %388 = vector.broadcast %cst_114 : f32 to vector<16x64xf32>
    %389 = arith.addf %387, %388 : vector<16x64xf32>
    %390 = arith.mulf %389, %376 : vector<16x64xf32>
    %cst_115 = arith.constant 0.000000e+00 : f32
    %391 = vector.broadcast %cst_115 : f32 to vector<16x64xf32>
    %392 = arith.subf %391, %371 : vector<16x64xf32>
    %393 = arith.mulf %392, %371 : vector<16x64xf32>
    %394 = math.exp %393 : vector<16x64xf32>
    %395 = arith.mulf %390, %394 : vector<16x64xf32>
    %cst_116 = arith.constant 1.000000e+00 : f32
    %396 = vector.broadcast %cst_116 : f32 to vector<16x64xf32>
    %397 = arith.subf %396, %395 : vector<16x64xf32>
    %cst_117 = arith.constant 0.000000e+00 : f32
    %398 = vector.broadcast %cst_117 : f32 to vector<16x64xf32>
    %399 = arith.cmpf oge, %370, %398 : vector<16x64xf32>
    %cst_118 = arith.constant 0.000000e+00 : f32
    %400 = vector.broadcast %cst_118 : f32 to vector<16x64xf32>
    %401 = arith.subf %400, %397 : vector<16x64xf32>
    %402 = arith.select %399, %397, %401 : vector<16x64xi1>, vector<16x64xf32>
    %cst_119 = arith.constant 1.000000e+00 : f32
    %403 = vector.broadcast %cst_119 : f32 to vector<16x64xf32>
    %404 = arith.addf %403, %402 : vector<16x64xf32>
    %405 = arith.mulf %368, %404 : vector<16x64xf32>
    %406 = arith.truncf %405 : vector<16x64xf32> to vector<16x64xbf16>
    %c256 = arith.constant 256 : index
    %c0_120 = arith.constant 0 : index
    %407 = vector.load %arg2[%c256, %c0_120] : memref<480x128xbf16, #tpu.memory_space<vmem>>, vector<64x32xbf16>
    %cst_121 = arith.constant dense<0.000000e+00> : vector<16x32xf32>
    %408 = tpu.matmul %406, %407, %cst_121 {dimension_numbers = #tpu.dot_dimension_numbers<[1], [0], [0], [1], [0, 0, 1, 1], [], []>} : vector<16x64xbf16>, vector<64x32xbf16>, vector<16x32xf32> -> vector<16x32xf32>
    %c13 = arith.constant 13 : index
    %c0_122 = arith.constant 0 : index
    %409 = vector.load %arg3[%c13, %c0_122] : memref<27x128xf32, #tpu.memory_space<vmem>>, vector<1x32xf32>
    %410 = vector.broadcast %409 : vector<1x32xf32> to vector<16x32xf32>
    %411 = arith.addf %408, %410 : vector<16x32xf32>
    %412 = arith.addf %360, %411 : vector<16x32xf32>
    %c14 = arith.constant 14 : index
    %c0_123 = arith.constant 0 : index
    %413 = vector.load %arg3[%c14, %c0_123] : memref<27x128xf32, #tpu.memory_space<vmem>>, vector<1x32xf32>
    %c15 = arith.constant 15 : index
    %c0_124 = arith.constant 0 : index
    %414 = vector.load %arg3[%c15, %c0_124] : memref<27x128xf32, #tpu.memory_space<vmem>>, vector<1x32xf32>
    %cst_125 = arith.constant dense<0.000000e+00> : vector<16xf32>
    %415 = vector.multi_reduction <add>, %412, %cst_125 [1] : vector<16x32xf32> to vector<16xf32>
    %416 = vector.shape_cast %415 : vector<16xf32> to vector<16x1xf32>
    %cst_126 = arith.constant 3.200000e+01 : f32
    %417 = vector.broadcast %cst_126 : f32 to vector<16x1xf32>
    %418 = arith.divf %416, %417 : vector<16x1xf32>
    %419 = vector.broadcast %418 : vector<16x1xf32> to vector<16x32xf32>
    %420 = arith.subf %412, %419 : vector<16x32xf32>
    %421 = arith.mulf %420, %420 : vector<16x32xf32>
    %cst_127 = arith.constant dense<0.000000e+00> : vector<16xf32>
    %422 = vector.multi_reduction <add>, %421, %cst_127 [1] : vector<16x32xf32> to vector<16xf32>
    %423 = vector.shape_cast %422 : vector<16xf32> to vector<16x1xf32>
    %cst_128 = arith.constant 3.200000e+01 : f32
    %424 = vector.broadcast %cst_128 : f32 to vector<16x1xf32>
    %425 = arith.divf %423, %424 : vector<16x1xf32>
    %426 = vector.broadcast %418 : vector<16x1xf32> to vector<16x32xf32>
    %427 = arith.subf %412, %426 : vector<16x32xf32>
    %cst_129 = arith.constant 9.99999996E-13 : f32
    %428 = vector.broadcast %cst_129 : f32 to vector<16x1xf32>
    %429 = arith.addf %425, %428 : vector<16x1xf32>
    %430 = math.rsqrt %429 : vector<16x1xf32>
    %431 = vector.broadcast %430 : vector<16x1xf32> to vector<16x32xf32>
    %432 = arith.mulf %427, %431 : vector<16x32xf32>
    %433 = vector.broadcast %413 : vector<1x32xf32> to vector<16x32xf32>
    %434 = arith.mulf %432, %433 : vector<16x32xf32>
    %435 = vector.broadcast %414 : vector<1x32xf32> to vector<16x32xf32>
    %436 = arith.addf %434, %435 : vector<16x32xf32>
    %437 = vector.shape_cast %436 : vector<16x32xf32> to vector<2x8x32xf32>
    %438 = vector.extract_strided_slice %437 {offsets = [0, 0, 0], sizes = [2, 1, 32], strides = [1, 1, 1]} : vector<2x8x32xf32> to vector<2x1x32xf32>
    %439 = vector.shape_cast %438 : vector<2x1x32xf32> to vector<2x32xf32>
    %c448 = arith.constant 448 : index
    %c0_130 = arith.constant 0 : index
    %440 = vector.load %arg2[%c448, %c0_130] : memref<480x128xbf16, #tpu.memory_space<vmem>>, vector<32x2xbf16>
    %c26 = arith.constant 26 : index
    %c0_131 = arith.constant 0 : index
    %441 = vector.load %arg3[%c26, %c0_131] : memref<27x128xf32, #tpu.memory_space<vmem>>, vector<1x2xf32>
    %442 = arith.truncf %439 : vector<2x32xf32> to vector<2x32xbf16>
    %cst_132 = arith.constant dense<0.000000e+00> : vector<2x2xf32>
    %443 = tpu.matmul %442, %440, %cst_132 {dimension_numbers = #tpu.dot_dimension_numbers<[1], [0], [0], [1], [0, 0, 1, 1], [], []>} : vector<2x32xbf16>, vector<32x2xbf16>, vector<2x2xf32> -> vector<2x2xf32>
    %444 = vector.broadcast %441 : vector<1x2xf32> to vector<2x2xf32>
    %445 = arith.addf %443, %444 : vector<2x2xf32>
    %c0_133 = arith.constant 0 : index
    %c0_134 = arith.constant 0 : index
    %446 = vector.load %arg4[%c0_133, %c0_134] : memref<2x2xf32, #tpu.memory_space<vmem>>, vector<2x2xf32>
    tpu.vector_store %arg4[%c0_133, %c0_134], %445 {strides = array<i32>} : memref<2x2xf32, #tpu.memory_space<vmem>>, vector<2x2xf32>,
    return
  }
}

</mosaic_0001>

<bundles_post_ra>
// kernel: tpu_custom_call.1
= control target key start
LH: loop header
LB: loop body
LE: loop exit
PB: predicated region body
PF: predicated region fallthrough
CT: control target
= control target key end

     0   :  { %9 = vsyncpa [#allocation3], 0  ;;  %s5156_s0 = inlined_call_operand.vmem [shape: s32[16,1], index: 0, kind: input, shape index: {}]   ;;  %s5157_s1 = inlined_call_operand.vmem [shape: s32[2,8], index: 1, kind: input, shape index: {}]   ;;  %s5158_s2 = inlined_call_operand.hbm [shape: bf16[480,128], index: 2, kind: input, shape index: {}]   ;;  %s5159_s3 = inlined_call_operand.hbm [shape: f32[27,128], index: 3, kind: input, shape index: {}]   ;;  %s5160_s4 = inlined_call_operand.hbm [shape: f32[2,2], index: 4, kind: output, shape index: {}]  }
   0x1   :  { %10 = vsyncpa [#allocation6], 0 }
   0x2   :  { %11 = vsyncpa [#allocation4], 0  ;;  %s4602_s15 = smov [#allocation2]   ;;  %s4530_s19 = scalar_lea.hbm %s5158_s2, 3840 }
   0x3   :  { %s21_s16 = sshll.u32 %s4602_s15, 4  ;;  %p4531_p0 = scmp.ne.s32.totalorder %s5158_s2, %s4530_s19  ;;  %s22_s16 = int_to_ptr.vmem [resolvable:$true] %s21_s16 }
   0x4   :  { %p4534_p1 = scmp.lt.u32.totalorder %s4530_s19, %s5158_s2 }
   0x6   :  { %p4536_p2 = pnand %p4534_p1, %p4531_p0 }
   0x8   :  { %4539 = shalt.err (!%p4536_p2)
}
   0x9   :  { %s4540_s24 = scalar_lea.vmem %s22_s16, 3840  ;;  %p4545_p4 = scmp.lt.s32.totalorder %s22_s16, %s22_s16 }
   0xa   :  { %p4541_p3 = scmp.ne.s32.totalorder %s22_s16, %s4540_s24  ;;  %p4546_p5 = scmp.lt.s32.totalorder %s4540_s24, %s4540_s24 }
   0xc   :  { %p4547_p6 = por %p4546_p5, %p4545_p4 }
   0xe   :  { %p4548_p7 = pnand %p4547_p6, %p4541_p3 }
  0x10   :  { %4551 = shalt.err (!%p4548_p7)
}
  0x11   :  { %s4603_s25 = smov 64   ;;  %s4604_s26 = smov 4  }
  0x12   :  { %27 = dma.hbm_to_vmem [thread:$0]  %s5158_s2, 3840, %s22_s16, [#allocation3], %s4603_s25, %s4603_s25, %s4604_s26  }
  0x13   :  { %s4605_s29 = smov [#allocation5]   ;;  %s4552_s7 = scalar_lea.hbm %s5159_s3, 512 }
  0x14   :  { %s33_s30 = sshll.u32 %s4605_s29, 4  ;;  %p4553_p8 = scmp.ne.s32.totalorder %s5159_s3, %s4552_s7  ;;  %s34_s30 = int_to_ptr.vmem [resolvable:$true] %s33_s30 }
  0x15   :  { %p4556_p9 = scmp.lt.u32.totalorder %s4552_s7, %s5159_s3 }
  0x17   :  { %p4558_p10 = pnand %p4556_p9, %p4553_p8 }
  0x19   :  { %4561 = shalt.err (!%p4558_p10)
}
  0x1a   :  { %s4562_s12 = scalar_lea.vmem %s34_s30, 512  ;;  %p4567_p12 = scmp.lt.s32.totalorder %s34_s30, %s34_s30 }
  0x1b   :  { %p4563_p11 = scmp.ne.s32.totalorder %s34_s30, %s4562_s12  ;;  %p4568_p13 = scmp.lt.s32.totalorder %s4562_s12, %s4562_s12 }
  0x1d   :  { %p4569_p0 = por %p4568_p13, %p4567_p12 }
  0x1f   :  { %p4570_p1 = pnand %p4569_p0, %p4563_p11 }
  0x21   :  { %4573 = shalt.err (!%p4570_p1)
}
  0x22   :  { %s4606_s2 = smov 128   ;;  %s4607_s13 = smov 8  }
  0x23   :  { %39 = dma.hbm_to_vmem [thread:$0]  %s5159_s3, 512, %s34_s30, [#allocation6], %s4606_s2, %s4606_s2, %s4607_s13  }
  0x24   :  { %4596 = dma.done.wait [#allocation3], 3840  }
  0x25   :  { %4597 = vsyncadd [#allocation3], 4294963456 }
  0x26   :  { %4598 = dma.done.wait [#allocation6], 512  }
  0x27   :  { %4599 = vsyncadd [#allocation6], 4294966784  ;;  %v4608_v0 = vmov 0   ;;  %v4609_v1 = vmov 0.0   ;;  %v47_v2 = vld [vmem:[%s5156_s0] sm:$0xff]  ;;  %v4400_v3 = vld [vmem:[#allocation2 + $0xa0] sm:$0xff]   ;;  %v49_v12 = vlaneseq }
  0x28   :  { %4369 = vset.pattern.permute.xlu0 %v4608_v0  ;;  %4085 = vmatprep.subr.bf16.mxu0 %v4609_v1  ;;  %v48_v4 = vld [vmem:[%s5156_s0 + $0x8] sm:$0xff]  ;;  %v4401_v5 = vld [vmem:[#allocation2 + $0xa8] sm:$0xff]   ;;  %vm4610_vm0 = vmmov 0   ;;  %v4403_v7 = vld [vmem:[#allocation2 + $0xb8] sm:$0xff]   ;;  %v4611_v16 = vmov 1.0|1.0  }
  0x29   :  { %4105 = vmatprep.subr.bf16.mxu1 %v4609_v1  ;;  %52 = vperm.xlu0 %4369, %v47_v2   ;;  %v4402_v6 = vld [vmem:[#allocation2 + $0xb0] sm:$0xff]   ;;  %v4404_v8 = vld [vmem:[#allocation2 + $0xc0] sm:$0xff]   ;;  %v4405_v9 = vld [vmem:[#allocation2 + $0xc8] sm:$0xff]   ;;  %v50_v14 = vand.u32 127, %v49_v12  ;;  %vm172_vm4 = vcmask 261120   ;;  %s4612_s0 = smov 96  }
  0x2a   :  { %4086 = vmatpush3.bf16.msra.mxu0 %v4400_v3  ;;  %4101 = vmatprep.mubr.msk.bf16.mxu0 %vm4610_vm0, %v4609_v1  ;;  %v4406_v10 = vld [vmem:[#allocation2 + $0xd0] sm:$0xff]   ;;  %v4407_v11 = vld [vmem:[#allocation2 + $0xd8] sm:$0xff]   ;;  %v167_v17 = vld [vmem:[#allocation5 + $0x10] sm:$0xff]  ;;  %vm318_vm5 = vcmask 64512   ;;  %v4613_v3 = vmov 1966171168  }
  0x2b   :  { %4087 = vmatprep.subr.bf16.mxu0 %v4609_v1  ;;  %4109 = vmatprep.mubr.msk.bf16.mxu1 %vm4610_vm0, %v4609_v1  ;;  %v4408_v36 = vld [vmem:[#allocation2] sm:$0xff]   ;;  %v4409_v37 = vld [vmem:[#allocation2 + $0x8] sm:$0xff]   ;;  %v3885_v55 = vld [vmem:[#allocation5] ss:$0 sm:$0xff]  ;;  %s4615_s21 = smov 120   ;;  %s4616_s22 = smov 56  }
  0x2c   :  { %4106 = vmatpush3.bf16.msra.mxu1 %v4408_v36  ;;  %v3883_v46 = vld [vmem:[#allocation5 + $0x18] ss:$0 sm:$0xff]  ;;  %v3884_v50 = vld [vmem:[#allocation5 + $0x19] ss:$0 sm:$0xff]  ;;  %s4617_s23 = smov 80   ;;  %s4618_s24 = smov 112  }
  0x2d   :  { %55 = vperm.xlu0 %4369, %v48_v4   ;;  %4107 = vmatprep.subr.bf16.mxu1 %v4609_v1  ;;  %v212_v0 = vld [vmem:[%s5157_s1] sm:$0x3]  ;;  %v218_v4 = vunpack.c.l.s4 %v4613_v3  ;;  %s4614_s1 = smov 88   ;;  %s4619_s26 = smov 48   ;;  %vm1660_vm6 = vcmask 130048   ;;  %vm1663_vm7 = vcmask 195584  }
  0x2e   :  { %4088 = vmatpush3.bf16.msra.mxu0 %v4401_v5  ;;  %v213_v2 = vcvt.s32.f32 %v212_v0  ;;  %s4620_s27 = smov 72   ;;  %s4621_s28 = smov 104   ;;  %vm1930_vm10 = vcmask 523264   ;;  %vm3797_vm13 = vcmask 1041409   ;;  %vm3855_vm14 = vcmask 9216  }
  0x2f   :  { %4089 = vmatprep.subr.bf16.mxu0 %v4609_v1  ;;  %s4622_s29 = smov 40   ;;  %s4623_s30 = smov 16  }
  0x30   :  { %4108 = vmatpush3.bf16.msra.mxu1 %v4409_v37  ;;  %v214_v5 = vsub.f32 1.0, %v213_v2  ;;  %s4624_s5 = smov 24  }
  0x31   :  { %4113 = vmatprep.subr.mxu1 %v4609_v1 }
  0x32   :  { %4090 = vmatpush3.bf16.msra.mxu0 %v4402_v6  ;;  %v219_v6 = vunpack.c.0.s8 %v218_v4 }
  0x33   :  { %4091 = vmatprep.subr.bf16.mxu0 %v4609_v1 }
  0x36   :  { %4092 = vmatpush3.bf16.msra.mxu0 %v4403_v7  ;;  %v221_v7 = vshrl.u32 %v49_v12, 7 }
  0x37   :  { %4093 = vmatprep.subr.bf16.mxu0 %v4609_v1 }
  0x3a   :  { %4094 = vmatpush3.bf16.msra.mxu0 %v4404_v8  ;;  %v215_v8 = vmul.f32 -1e+09, %v214_v5 }
  0x3b   :  { %4095 = vmatprep.subr.bf16.mxu0 %v4609_v1 }
  0x3e   :  { %4096 = vmatpush3.bf16.msra.mxu0 %v4405_v9  ;;  %v222_v9 = vsub.s32 %v219_v6, %v221_v7 }
  0x3f   :  { %4097 = vmatprep.subr.bf16.mxu0 %v4609_v1 }
  0x42   :  { %4098 = vmatpush3.bf16.msra.mxu0 %v4406_v10  ;;  %v223_v10 = vrot.slane %v215_v8, %v222_v9 }
  0x43   :  { %4099 = vmatprep.subr.bf16.mxu0 %v4609_v1 }
  0x46   :  { %4100 = vmatpush3.bf16.msra.mxu0 %v4407_v11  ;;  %v224_v11 = vcombine.high %v223_v10, %v223_v10 }
  0x47   :  { %4153 = vmatprep.subr.mxu0 %v4609_v1 }
  0xa8   :  { %v53_v13 = vpop.permute.xlu0 %52 }
  0xa9   :  { %vm57_vm1 = vcmp.eq.s32.totalorder %v50_v14, %v53_v13  ;;  %v231_v13 = vrot.slane %v223_v10, %v222_v9 }
  0xac   :  { %v56_v15 = vpop.permute.xlu0 %55 }
  0xad   :  { %vm58_vm2 = vcmp.eq.s32.totalorder %v50_v14, %v56_v15  ;;  %v307_v14 = vsub.s32 0, %v221_v7  ;;  %v238_v15 = vrot.slane %v224_v11, %v222_v9 }
  0xae   :  { %vm3881_vm3 = vmpackc.low %vm58_vm2, %vm57_vm1 }
  0xaf   :  { %4102 = vmatmul.mubr.msk.bf16.vlgmr.msra.gmra.mrb[0].mxu0 %vm3881_vm3, %v4611_v16  ;;  %v4740_v16 = vrot.slane %v231_v13, %v307_v14 }
  0xb0   :  { %4155 = vmatprep.mubr.msk.f32.mxu0 %vm4610_vm0, %v4609_v1 }
 0x182   :  { %v160_v18 = vpop.f32.mrb[0].mxu0 }
 0x183   :  { %v168_v19 = vadd.f32 %v167_v17, %v160_v18  ;;  %v4103_v20 = vpop.f32.mrb[1].mxu0  ;;  %v4742_v18 = vrot.slane %v238_v15, %v307_v14 }
 0x184   :  { %v163_v21 = vpop.f32.mrb[2].mxu0 }
 0x185   :  { %v169_v22 = vadd.f32 %v167_v17, %v163_v21  ;;  %v4104_v23 = vpop.f32.mrb[3].mxu0  ;;  %v173_v24 = vsel %vm172_vm4, %v168_v19, 0.0 }
 0x186   :  { %174 = vadd.xlane.f32.xlu1 %v173_v24 }
 0x187   :  { %v176_v25 = vsel %vm172_vm4, %v169_v22, 0.0 }
 0x18a   :  { %177 = vadd.xlane.f32.xlu1 %v176_v25 }
 0x213   :  { %v175_v26 = vpop.xlane.xlu1 %174 }
 0x214   :  { %v180_v27 = vmul.f32 0.03125, %v175_v26 }
 0x216   :  { %v182_v28 = vsub.f32 %v168_v19, %v180_v27 }
 0x217   :  { %v178_v29 = vpop.xlane.xlu1 %177 }
 0x218   :  { %v181_v30 = vmul.f32 0.03125, %v178_v29  ;;  %v184_v31 = vmul.f32 %v182_v28, %v182_v28 }
 0x21a   :  { %v183_v32 = vsub.f32 %v169_v22, %v181_v30  ;;  %v186_v33 = vsel %vm172_vm4, %v184_v31, 0.0 }
 0x21b   :  { %187 = vadd.xlane.f32.xlu0 %v186_v33 }
 0x21c   :  { %v185_v34 = vmul.f32 %v183_v32, %v183_v32 }
 0x21e   :  { %v189_v35 = vsel %vm172_vm4, %v185_v34, 0.0 }
 0x21f   :  { %190 = vadd.xlane.f32.xlu1 %v189_v35 }
 0x2a8   :  { %v188_v38 = vpop.xlane.xlu0 %187 }
 0x2a9   :  { %v192_v39 = vmul.f32 0.03125, %v188_v38 }
 0x2ab   :  { %v194_v40 = vadd.f32 1e-12, %v192_v39 }
 0x2ac   :  { %v191_v41 = vpop.xlane.xlu1 %190 }
 0x2ad   :  { %4430 = vrsqrt.f32 %v194_v40  ;;  %v193_v42 = vmul.f32 0.03125, %v191_v41 }
 0x2af   :  { %v195_v43 = vadd.f32 1e-12, %v193_v42 }
 0x2b1   :  { %4432 = vrsqrt.f32 %v195_v43 }
 0x2b7   :  { %v4431_v44 = vpop.eup %4430 }
 0x2b8   :  { %v198_v45 = vmul.f32 %v4431_v44, %v182_v28 }
 0x2ba   :  { %v204_v49 = vmul.f32 %v3883_v46, %v198_v45 }
 0x2bb   :  { %v4433_v47 = vpop.eup %4432 }
 0x2bc   :  { %v199_v48 = vmul.f32 %v4433_v47, %v183_v32  ;;  %v4707_v52 = vadd.f32 %v3884_v50, %v204_v49 }
 0x2be   :  { %v205_v51 = vmul.f32 %v3883_v46, %v199_v48 }
 0x2c0   :  { %v4709_v53 = vadd.f32 %v3884_v50, %v205_v51 }
 0x2c2   :  { %v239_v54 = vpack.c.bf16 %v4709_v53, %v4707_v52 }
 0x2c4   :  { %4110 = vmatmul.mubr.msk.bf16.vlgmr.msra.gmra.mrb[0].mxu1 %vm172_vm4, %v239_v54 }
 0x2c5   :  { %4115 = vmatprep.mubr.msk.f32.mxu1 %vm4610_vm0, %v4609_v1 }
 0x397   :  { %v298_v56 = vpop.f32.mrb[0].mxu1 }
 0x398   :  { %v4716_v57 = vadd.f32 %v3885_v55, %v298_v56  ;;  %v4111_v58 = vpop.f32.mrb[1].mxu1 }
 0x399   :  { %v301_v59 = vpop.f32.mrb[2].mxu1 }
 0x39a   :  { %316 = vrot.lane.b32.xlu1 %v4716_v57, %s4612_s0  ;;  %v4112_v60 = vpop.f32.mrb[3].mxu1  ;;  %v4720_v61 = vadd.f32 %v3885_v55, %v301_v59 }
 0x39e   :  { %394 = vrot.lane.b32.xlu1 %v4720_v61, %s4612_s0 }
 0x40c   :  { %v317_v62 = vpop.permute.xlu1 %316 }
 0x40d   :  { %4114 = vmatpush3.xpose.msk.msra.mxu1 %vm318_vm5, %v317_v62 }
 0x40e   :  { %4118 = vmatprep.subr.mxu1 %v4609_v1 }
 0x410   :  { %4116 = vmatmul.mubr.msk.f32.vlgmr.msra.gmra.mrb[4].mxu1 %vm318_vm5, %v4716_v57  ;;  %v395_v63 = vpop.permute.xlu1 %394 }
 0x411   :  { %4119 = vmatpush3.xpose.msk.msra.mxu1 %vm318_vm5, %v395_v63  ;;  %4120 = vmatprep.mubr.msk.f32.mxu1 %vm4610_vm0, %v4609_v1 }
 0x412   :  { %4123 = vmatprep.subr.mxu1 %v4609_v1 }
 0x414   :  { %4121 = vmatmul.mubr.msk.f32.vlgmr.msra.gmra.mrb[6].mxu1 %vm318_vm5, %v4720_v61 }
 0x415   :  { %4125 = vmatprep.mubr.msk.f32.mxu1 %vm4610_vm0, %v4609_v1 }
 0x4e3   :  { %v389_v17 = vpop.f32.mrb[4].mxu1 }
 0x4e4   :  { %v390_v19 = vadd.f32 %v389_v17, %v4740_v16  ;;  %v4117_v20 = vpop.f32.mrb[5].mxu1 }
 0x4e6   :  { %v470_v21 = vsel %vm318_vm5, %v390_v19, -inf }
 0x4e7   :  { %471 = vmax.xlane.f32.xlu1 %v470_v21  ;;  %v466_v22 = vpop.f32.mrb[6].mxu1 }
 0x4e8   :  { %v467_v12 = vadd.f32 %v466_v22, %v4742_v18  ;;  %v4122_v23 = vpop.f32.mrb[7].mxu1 }
 0x4ea   :  { %v473_v24 = vsel %vm318_vm5, %v467_v12, -inf }
 0x4eb   :  { %474 = vmax.xlane.f32.xlu0 %v473_v24 }
 0x4f8   :  { %568 = vrot.lane.b32.xlu1 %v4720_v61, %s4603_s25 }
 0x501   :  { %492 = vrot.lane.b32.xlu0 %v4716_v57, %s4603_s25 }
 0x505   :  { %646 = vrot.lane.b32.xlu0 %v4716_v57, %s4614_s1 }
 0x574   :  { %v472_v25 = vpop.xlane.xlu1 %471 }
 0x575   :  { %v476_v26 = vsub.f32 %v390_v19, %v472_v25 }
 0x577   :  { %v478_v27 = vmul.f32 1.442695, %v476_v26 }
 0x578   :  { %v475_v28 = vpop.xlane.xlu0 %474  ;;  %v569_v41 = vpop.permute.xlu1 %568 }
 0x579   :  { %4434 = vpow2.f32 %v478_v27  ;;  %v477_v29 = vsub.f32 %v467_v12, %v475_v28 }
 0x57b   :  { %v480_v30 = vmul.f32 1.442695, %v477_v29 }
 0x57c   :  { %v493_v31 = vpop.permute.xlu0 %492 }
 0x57d   :  { %4436 = vpow2.f32 %v480_v30  ;;  %4124 = vmatpush3.msra.mxu1 %v493_v31 }
 0x57e   :  { %4128 = vmatprep.subr.mxu1 %v4609_v1 }
 0x580   :  { %v647_v36 = vpop.permute.xlu0 %646 }
 0x583   :  { %v4435_v32 = vpop.eup %4434 }
 0x584   :  { %v482_v33 = vsel %vm318_vm5, %v4435_v32, 0.0 }
 0x585   :  { %483 = vadd.xlane.f32.xlu0 %v482_v33 }
 0x587   :  { %v4437_v34 = vpop.eup %4436 }
 0x588   :  { %v485_v35 = vsel %vm318_vm5, %v4437_v34, 0.0 }
 0x589   :  { %486 = vadd.xlane.f32.xlu0 %v485_v35 }
 0x59f   :  { %644 = vrot.lane.b32.xlu0 %v4716_v57, %s4615_s21 }
 0x5a3   :  { %724 = vrot.lane.b32.xlu0 %v4720_v61, %s4614_s1 }
 0x5a7   :  { %722 = vrot.lane.b32.xlu0 %v4720_v61, %s4615_s21 }
 0x612   :  { %v484_v37 = vpop.xlane.xlu0 %483 }
 0x613   :  { %4438 = vrcp.f32 %v484_v37 }
 0x616   :  { %v487_v38 = vpop.xlane.xlu0 %486 }
 0x617   :  { %4440 = vrcp.f32 %v487_v38 }
 0x61a   :  { %v645_v44 = vpop.permute.xlu0 %644 }
 0x61d   :  { %v4439_v39 = vpop.eup %4438 }
 0x61e   :  { %v490_v40 = vmul.f32 %v4439_v39, %v4435_v32  ;;  %v725_v45 = vpop.permute.xlu0 %724 }
 0x620   :  { %4126 = vmatmul.mubr.msk.f32.vlgmr.msra.gmra.mrb[8].mxu1 %vm318_vm5, %v490_v40 }
 0x621   :  { %v4441_v42 = vpop.eup %4440  ;;  %4129 = vmatpush3.msra.mxu1 %v569_v41  ;;  %4130 = vmatprep.mubr.msk.f32.mxu1 %vm4610_vm0, %v4609_v1 }
 0x622   :  { %v491_v43 = vmul.f32 %v4441_v42, %v4437_v34  ;;  %4133 = vmatprep.subr.mxu1 %v4609_v1  ;;  %v723_v46 = vpop.permute.xlu0 %722 }
 0x624   :  { %4131 = vmatmul.mubr.msk.f32.vlgmr.msra.gmra.mrb[10].mxu1 %vm318_vm5, %v491_v43 }
 0x625   :  { %4135 = vmatprep.mubr.msk.f32.mxu1 %vm4610_vm0, %v4609_v1 }
 0x628   :  { %4134 = vmatpush3.xpose.msk.msra.mxu1 %vm318_vm5, %v647_v36 }
 0x629   :  { %4138 = vmatprep.subr.mxu1 %v4609_v1 }
 0x62b   :  { %4136 = vmatmul.mubr.msk.f32.vlgmr.msra.gmra.mrb[12].mxu1 %vm318_vm5, %v645_v44 }
 0x62c   :  { %4139 = vmatpush3.xpose.msk.msra.mxu1 %vm318_vm5, %v725_v45  ;;  %4140 = vmatprep.mubr.msk.f32.mxu1 %vm4610_vm0, %v4609_v1 }
 0x62d   :  { %4143 = vmatprep.subr.mxu1 %v4609_v1 }
 0x62f   :  { %4141 = vmatmul.mubr.msk.f32.vlgmr.msra.gmra.mrb[14].mxu1 %vm318_vm5, %v723_v46 }
 0x630   :  { %4145 = vmatprep.mubr.msk.f32.mxu1 %vm4610_vm0, %v4609_v1 }
 0x6f3   :  { %v4780_v47 = vpop.f32.mrb[8].mxu1 }
 0x6f4   :  { %v4127_v48 = vpop.f32.mrb[9].mxu1 }
 0x6f7   :  { %v4782_v49 = vpop.f32.mrb[10].mxu1 }
 0x6f8   :  { %v4132_v50 = vpop.f32.mrb[11].mxu1 }
 0x6fe   :  { %v718_v51 = vpop.f32.mrb[12].mxu1 }
 0x6ff   :  { %v719_v54 = vadd.f32 %v718_v51, %v4740_v16  ;;  %v4137_v55 = vpop.f32.mrb[13].mxu1 }
 0x701   :  { %v800_v56 = vsel %vm318_vm5, %v719_v54, -inf }
 0x702   :  { %801 = vmax.xlane.f32.xlu1 %v800_v56  ;;  %v796_v58 = vpop.f32.mrb[14].mxu1 }
 0x703   :  { %v797_v59 = vadd.f32 %v796_v58, %v4742_v18  ;;  %v4142_v60 = vpop.f32.mrb[15].mxu1 }
 0x705   :  { %v803_v62 = vsel %vm318_vm5, %v797_v59, -inf }
 0x706   :  { %804 = vmax.xlane.f32.xlu0 %v803_v62 }
 0x713   :  { %898 = vrot.lane.b32.xlu1 %v4720_v61, %s4616_s22 }
 0x717   :  { %976 = vrot.lane.b32.xlu1 %v4716_v57, %s4617_s23 }
 0x78f   :  { %v802_v63 = vpop.xlane.xlu1 %801 }
 0x790   :  { %v806_v0 = vsub.f32 %v719_v54, %v802_v63 }
 0x792   :  { %v808_v2 = vmul.f32 1.442695, %v806_v0 }
 0x793   :  { %v899_v3 = vpop.permute.xlu1 %898  ;;  %v805_v4 = vpop.xlane.xlu0 %804 }
 0x794   :  { %4442 = vpow2.f32 %v808_v2  ;;  %v807_v5 = vsub.f32 %v797_v59, %v805_v4 }
 0x796   :  { %v810_v6 = vmul.f32 1.442695, %v807_v5 }
 0x797   :  { %v977_v7 = vpop.permute.xlu1 %976 }
 0x798   :  { %4444 = vpow2.f32 %v810_v6  ;;  %4154 = vmatpush3.xpose.msk.msra.mxu0 %vm318_vm5, %v977_v7 }
 0x799   :  { %4163 = vmatprep.subr.mxu0 %v4609_v1 }
 0x79e   :  { %v4443_v8 = vpop.eup %4442 }
 0x79f   :  { %v812_v9 = vsel %vm318_vm5, %v4443_v8, 0.0 }
 0x7a0   :  { %813 = vadd.xlane.f32.xlu0 %v812_v9 }
 0x7a2   :  { %v4445_v10 = vpop.eup %4444 }
 0x7a3   :  { %v815_v11 = vsel %vm318_vm5, %v4445_v10, 0.0 }
 0x7a4   :  { %816 = vadd.xlane.f32.xlu1 %v815_v11 }
 0x7b5   :  { %974 = vrot.lane.b32.xlu1 %v4716_v57, %s4618_s24 }
 0x7b6   :  { %822 = vrot.lane.b32.xlu0 %v4716_v57, %s4616_s22 }
 0x7ba   :  { %1054 = vrot.lane.b32.xlu0 %v4720_v61, %s4617_s23 }
 0x7be   :  { %1052 = vrot.lane.b32.xlu0 %v4720_v61, %s4618_s24 }
 0x82d   :  { %v814_v13 = vpop.xlane.xlu0 %813 }
 0x82e   :  { %4446 = vrcp.f32 %v814_v13 }
 0x831   :  { %v817_v14 = vpop.xlane.xlu1 %816  ;;  %v823_v15 = vpop.permute.xlu0 %822 }
 0x832   :  { %4448 = vrcp.f32 %v817_v14  ;;  %4144 = vmatpush3.msra.mxu1 %v823_v15 }
 0x833   :  { %4148 = vmatprep.subr.mxu1 %v4609_v1 }
 0x835   :  { %v975_v17 = vpop.permute.xlu1 %974  ;;  %v1055_v12 = vpop.permute.xlu0 %1054 }
 0x836   :  { %4156 = vmatmul.mubr.msk.f32.vlgmr.msra.gmra.mrb[4].mxu0 %vm318_vm5, %v975_v17 }
 0x837   :  { %4165 = vmatprep.mubr.msk.f32.mxu0 %vm4610_vm0, %v4609_v1 }
 0x838   :  { %v4447_v19 = vpop.eup %4446 }
 0x839   :  { %v820_v20 = vmul.f32 %v4447_v19, %v4443_v8  ;;  %v1053_v23 = vpop.permute.xlu0 %1052 }
 0x83b   :  { %4146 = vmatmul.mubr.msk.f32.vlgmr.msra.gmra.mrb[16].mxu1 %vm318_vm5, %v820_v20 }
 0x83c   :  { %v4449_v21 = vpop.eup %4448  ;;  %4149 = vmatpush3.msra.mxu1 %v899_v3  ;;  %4150 = vmatprep.mubr.msk.f32.mxu1 %vm4610_vm0, %v4609_v1 }
 0x83d   :  { %v821_v22 = vmul.f32 %v4449_v21, %v4445_v10  ;;  %4158 = vmatprep.subr.mxu1 %v4609_v1 }
 0x83f   :  { %4151 = vmatmul.mubr.msk.f32.vlgmr.msra.gmra.mrb[18].mxu1 %vm318_vm5, %v821_v22 }
 0x840   :  { %4160 = vmatprep.mubr.msk.f32.mxu1 %vm4610_vm0, %v4609_v1 }
 0x843   :  { %4159 = vmatpush3.xpose.msk.msra.mxu1 %vm318_vm5, %v1055_v12 }
 0x844   :  { %4168 = vmatprep.subr.mxu1 %v4609_v1 }
 0x846   :  { %4161 = vmatmul.mubr.msk.f32.vlgmr.msra.gmra.mrb[20].mxu1 %vm318_vm5, %v1053_v23 }
 0x847   :  { %4170 = vmatprep.mubr.msk.f32.mxu1 %vm4610_vm0, %v4609_v1 }
 0x909   :  { %v1048_v24 = vpop.f32.mrb[4].mxu0 }
 0x90a   :  { %v1049_v25 = vadd.f32 %v1048_v24, %v4740_v16  ;;  %v4157_v26 = vpop.f32.mrb[5].mxu0 }
 0x90c   :  { %v1130_v27 = vsel %vm318_vm5, %v1049_v25, -inf }
 0x90d   :  { %1131 = vmax.xlane.f32.xlu1 %v1130_v27 }
 0x90e   :  { %v4822_v28 = vpop.f32.mrb[16].mxu1 }
 0x90f   :  { %v4147_v29 = vpop.f32.mrb[17].mxu1 }
 0x912   :  { %v4824_v30 = vpop.f32.mrb[18].mxu1 }
 0x913   :  { %v4370_v31 = vpack.i.bf16 %v4824_v30, %v4822_v28  ;;  %v4152_v32 = vpop.f32.mrb[19].mxu1 }
 0x919   :  { %v1126_v33 = vpop.f32.mrb[20].mxu1 }
 0x91a   :  { %v1127_v34 = vadd.f32 %v1126_v33, %v4742_v18  ;;  %v4162_v35 = vpop.f32.mrb[21].mxu1 }
 0x91c   :  { %v1133_v36 = vsel %vm318_vm5, %v1127_v34, -inf }
 0x91d   :  { %1134 = vmax.xlane.f32.xlu0 %v1133_v36  ;;  %v4411_v36 = vld [vmem:[#allocation2 + $0x18] sm:$0xff]  }
 0x91e   :  { %1228 = vrot.lane.b32.xlu1 %v4720_v61, %s4619_s26 }
 0x922   :  { %1306 = vrot.lane.b32.xlu1 %v4716_v57, %s4620_s27 }
 0x99a   :  { %v1132_v37 = vpop.xlane.xlu1 %1131 }
 0x99b   :  { %v1136_v38 = vsub.f32 %v1049_v25, %v1132_v37 }
 0x99d   :  { %v1138_v39 = vmul.f32 1.442695, %v1136_v38 }
 0x99e   :  { %v1229_v40 = vpop.permute.xlu1 %1228 }
 0x99f   :  { %4450 = vpow2.f32 %v1138_v39  ;;  %4169 = vmatpush3.msra.mxu1 %v1229_v40 }
 0x9a0   :  { %4178 = vmatprep.subr.mxu1 %v4609_v1 }
 0x9a2   :  { %v1307_v55 = vpop.permute.xlu1 %1306 }
 0x9a9   :  { %v4451_v41 = vpop.eup %4450 }
 0x9aa   :  { %v1135_v42 = vpop.xlane.xlu0 %1134  ;;  %v1142_v43 = vsel %vm318_vm5, %v4451_v41, 0.0 }
 0x9ab   :  { %v1137_v44 = vsub.f32 %v1127_v34, %v1135_v42  ;;  %1143 = vadd.xlane.f32.xlu0 %v1142_v43 }
 0x9ad   :  { %v1140_v45 = vmul.f32 1.442695, %v1137_v44 }
 0x9af   :  { %4452 = vpow2.f32 %v1140_v45 }
 0x9b9   :  { %v4453_v46 = vpop.eup %4452 }
 0x9ba   :  { %v1145_v48 = vsel %vm318_vm5, %v4453_v46, 0.0 }
 0x9bb   :  { %1146 = vadd.xlane.f32.xlu1 %v1145_v48 }
 0x9c1   :  { %1152 = vrot.lane.b32.xlu0 %v4716_v57, %s4619_s26 }
 0x9c5   :  { %1384 = vrot.lane.b32.xlu0 %v4720_v61, %s4620_s27 }
 0x9c9   :  { %1382 = vrot.lane.b32.xlu0 %v4720_v61, %s4621_s28 }
 0x9cc   :  { %1304 = vrot.lane.b32.xlu1 %v4716_v57, %s4621_s28 }
 0xa38   :  { %v1144_v50 = vpop.xlane.xlu0 %1143 }
 0xa39   :  { %4454 = vrcp.f32 %v1144_v50 }
 0xa3c   :  { %v1153_v51 = vpop.permute.xlu0 %1152 }
 0xa3d   :  { %4164 = vmatpush3.msra.mxu0 %v1153_v51 }
 0xa3e   :  { %4173 = vmatprep.subr.mxu0 %v4609_v1 }
 0xa40   :  { %v1385_v62 = vpop.permute.xlu0 %1384 }
 0xa43   :  { %v4455_v54 = vpop.eup %4454 }
 0xa44   :  { %v1150_v56 = vmul.f32 %v4455_v54, %v4451_v41  ;;  %v1383_v0 = vpop.permute.xlu0 %1382 }
 0xa46   :  { %4166 = vmatmul.mubr.msk.f32.vlgmr.msra.gmra.mrb[6].mxu0 %vm318_vm5, %v1150_v56 }
 0xa47   :  { %4174 = vmatpush3.xpose.msk.msra.mxu0 %vm318_vm5, %v1307_v55  ;;  %4175 = vmatprep.mubr.msk.f32.mxu0 %vm4610_vm0, %v4609_v1 }
 0xa48   :  { %v1147_v58 = vpop.xlane.xlu1 %1146  ;;  %4183 = vmatprep.subr.mxu0 %v4609_v1 }
 0xa49   :  { %4456 = vrcp.f32 %v1147_v58 }
 0xa4c   :  { %v1305_v59 = vpop.permute.xlu1 %1304 }
 0xa4d   :  { %4176 = vmatmul.mubr.msk.f32.vlgmr.msra.gmra.mrb[8].mxu0 %vm318_vm5, %v1305_v59 }
 0xa4e   :  { %4185 = vmatprep.mubr.msk.f32.mxu0 %vm4610_vm0, %v4609_v1 }
 0xa53   :  { %v4457_v60 = vpop.eup %4456 }
 0xa54   :  { %v1151_v63 = vmul.f32 %v4457_v60, %v4453_v46 }
 0xa56   :  { %4171 = vmatmul.mubr.msk.f32.vlgmr.msra.gmra.mrb[22].mxu1 %vm318_vm5, %v1151_v63 }
 0xa57   :  { %4179 = vmatpush3.xpose.msk.msra.mxu1 %vm318_vm5, %v1385_v62  ;;  %4180 = vmatprep.mubr.msk.f32.mxu1 %vm4610_vm0, %v4609_v1 }
 0xa58   :  { %4188 = vmatprep.subr.mxu1 %v4609_v1 }
 0xa5a   :  { %4181 = vmatmul.mubr.msk.f32.vlgmr.msra.gmra.mrb[24].mxu1 %vm318_vm5, %v1383_v0 }
 0xa5b   :  { %4190 = vmatprep.mubr.msk.f32.mxu1 %vm4610_vm0, %v4609_v1 }
 0xb19   :  { %v1224_v2 = vpop.f32.mrb[6].mxu0 }
 0xb1a   :  { %v4167_v3 = vpop.f32.mrb[7].mxu0 }
 0xb20   :  { %v1378_v4 = vpop.f32.mrb[8].mxu0 }
 0xb21   :  { %v1379_v5 = vadd.f32 %v1378_v4, %v4740_v16  ;;  %v4177_v6 = vpop.f32.mrb[9].mxu0 }
 0xb23   :  { %v1460_v7 = vsel %vm318_vm5, %v1379_v5, -inf }
 0xb24   :  { %1461 = vmax.xlane.f32.xlu1 %v1460_v7 }
 0xb29   :  { %v1300_v8 = vpop.f32.mrb[22].mxu1 }
 0xb2a   :  { %v4375_v9 = vpack.i.bf16 %v1300_v8, %v1224_v2  ;;  %v4172_v10 = vpop.f32.mrb[23].mxu1 }
 0xb2d   :  { %v1456_v11 = vpop.f32.mrb[24].mxu1 }
 0xb2e   :  { %v1457_v13 = vadd.f32 %v1456_v11, %v4742_v18  ;;  %v4182_v14 = vpop.f32.mrb[25].mxu1 }
 0xb30   :  { %v1463_v15 = vsel %vm318_vm5, %v1457_v13, -inf }
 0xb31   :  { %1464 = vmax.xlane.f32.xlu0 %v1463_v15 }
 0xbb1   :  { %v1462_v17 = vpop.xlane.xlu1 %1461 }
 0xbb2   :  { %v1466_v19 = vsub.f32 %v1379_v5, %v1462_v17 }
 0xbb4   :  { %v1468_v20 = vmul.f32 1.442695, %v1466_v19 }
 0xbb6   :  { %4458 = vpow2.f32 %v1468_v20  ;;  %v4412_v20 = vld [vmem:[#allocation2 + $0x20] sm:$0xff]  }
 0xbbe   :  { %v1465_v21 = vpop.xlane.xlu0 %1464 }
 0xbbf   :  { %v1467_v22 = vsub.f32 %v1457_v13, %v1465_v21 }
 0xbc0   :  { %v4459_v12 = vpop.eup %4458 }
 0xbc1   :  { %v1470_v23 = vmul.f32 1.442695, %v1467_v22  ;;  %v1472_v24 = vsel %vm318_vm5, %v4459_v12, 0.0 }
 0xbc2   :  { %1473 = vadd.xlane.f32.xlu0 %v1472_v24 }
 0xbc3   :  { %4460 = vpow2.f32 %v1470_v23 }
 0xbcd   :  { %v4461_v25 = vpop.eup %4460 }
 0xbce   :  { %v1475_v26 = vsel %vm318_vm5, %v4461_v25, 0.0 }
 0xbcf   :  { %1476 = vadd.xlane.f32.xlu1 %v1475_v26 }
 0xbd8   :  { %1482 = vrot.lane.b32.xlu0 %v4716_v57, %s4622_s29 }
 0xbdc   :  { %4376 = vrot.lane.b32.xlu0 %v4375_v9, %s4623_s30 }
 0xbe0   :  { %1558 = vrot.lane.b32.xlu1 %v4720_v61, %s4622_s29 }
 0xbe4   :  { %4371 = vrot.lane.b32.xlu1 %v4370_v31, %s4607_s13  ;;  %v4410_v31 = vld [vmem:[#allocation2 + $0x10] sm:$0xff]  }
 0xc4f   :  { %v1474_v27 = vpop.xlane.xlu0 %1473 }
 0xc50   :  { %4462 = vrcp.f32 %v1474_v27 }
 0xc53   :  { %v1483_v29 = vpop.permute.xlu0 %1482 }
 0xc54   :  { %4184 = vmatpush3.msra.mxu0 %v1483_v29  ;;  %v3917_v29 = vld [vmem:[#allocation5 + $0x2] ss:$0 sm:$0xff] }
 0xc55   :  { %4193 = vmatprep.subr.bf16.mxu0 %v4609_v1 }
 0xc57   :  { %v4377_v43 = vpop.permute.xlu0 %4376 }
 0xc58   :  { %v4379_v46 = vunpack.i.h.bf16 %v4377_v43  ;;  %v4378_v48 = vunpack.i.l.bf16 %v4377_v43 }
 0xc5a   :  { %v4463_v32 = vpop.eup %4462 }
 0xc5b   :  { %v1480_v33 = vmul.f32 %v4463_v32, %v4459_v12 }
 0xc5c   :  { %v1477_v57 = vpop.xlane.xlu1 %1476 }
 0xc5d   :  { %4464 = vrcp.f32 %v1477_v57  ;;  %4186 = vmatmul.mubr.msk.f32.vlgmr.msra.gmra.mrb[10].mxu0 %vm318_vm5, %v1480_v33 }
 0xc5e   :  { %4197 = vmatprep.mubr.msk.bf16.mxu0 %vm4610_vm0, %v4609_v1  ;;  %4194 = vmatpush3.bf16.msra.mxu0 %v4410_v31 }
 0xc5f   :  { %4195 = vmatprep.subr.bf16.mxu0 %v4609_v1 }
 0xc60   :  { %v1559_v61 = vpop.permute.xlu1 %1558 }
 0xc61   :  { %4189 = vmatpush3.msra.mxu1 %v1559_v61  ;;  %v3918_v61 = vld [vmem:[#allocation5 + $0x3] ss:$0 sm:$0xff] }
 0xc62   :  { %4201 = vmatprep.subr.bf16.mxu1 %v4609_v1  ;;  %4196 = vmatpush3.bf16.msra.mxu0 %v4411_v36  ;;  %v4415_v36 = vld [vmem:[#allocation2 + $0x38] sm:$0xff]  }
 0xc63   :  { %4209 = vmatprep.subr.bf16.mxu0 %v4609_v1 }
 0xc64   :  { %v4372_v40 = vpop.permute.xlu1 %4371 }
 0xc65   :  { %v4374_v41 = vunpack.i.h.bf16 %v4372_v40  ;;  %v4373_v42 = vunpack.i.l.bf16 %v4372_v40 }
 0xc67   :  { %v4465_v28 = vpop.eup %4464  ;;  %v1659_v44 = vsel %vm318_vm5, %v4782_v49, %v4374_v41  ;;  %v1658_v45 = vsel %vm318_vm5, %v4780_v47, %v4373_v42  ;;  %v3913_v47 = vld [vmem:[#allocation5 + $0x1] ss:$0 sm:$0xff] }
 0xc68   :  { %v1481_v30 = vmul.f32 %v4465_v28, %v4461_v25  ;;  %v1661_v55 = vsel %vm1660_vm6, %v1658_v45, %v4378_v48  ;;  %v1662_v56 = vsel %vm1660_vm6, %v1659_v44, %v4379_v46 }
 0xc6a   :  { %4191 = vmatmul.mubr.msk.f32.vlgmr.msra.gmra.mrb[26].mxu1 %vm318_vm5, %v1481_v30 }
 0xc6b   :  { %4205 = vmatprep.mubr.msk.bf16.mxu1 %vm4610_vm0, %v4609_v1  ;;  %4202 = vmatpush3.bf16.msra.mxu1 %v4412_v20 }
 0xc6c   :  { %4203 = vmatprep.subr.bf16.mxu1 %v4609_v1 }
 0xd30   :  { %v1554_v34 = vpop.f32.mrb[10].mxu0 }
 0xd31   :  { %v4187_v35 = vpop.f32.mrb[11].mxu0 }
 0xd32   :  { %v4414_v35 = vld [vmem:[#allocation2 + $0x30] sm:$0xff]  }
 0xd3d   :  { %v1630_v37 = vpop.f32.mrb[26].mxu1 }
 0xd3e   :  { %v4380_v38 = vpack.i.bf16 %v1630_v37, %v1554_v34  ;;  %v4192_v39 = vpop.f32.mrb[27].mxu1  ;;  %v4416_v37 = vld [vmem:[#allocation2 + $0x40] sm:$0xff]  }
 0xd3f   :  { %v3919_v39 = vld [vmem:[#allocation5 + $0x4] ss:$0 sm:$0xff] }
 0xd40   :  { %4381 = vrot.lane.b32.xlu1 %v4380_v38, %s4624_s5  ;;  %v4417_v38 = vld [vmem:[#allocation2 + $0x48] sm:$0xff]  }
 0xdb2   :  { %v4382_v50 = vpop.permute.xlu1 %4381 }
 0xdb3   :  { %v4384_v51 = vunpack.i.h.bf16 %v4382_v50  ;;  %v4383_v54 = vunpack.i.l.bf16 %v4382_v50 }
 0xdb5   :  { %v1665_v58 = vsel %vm1663_vm7, %v1662_v56, %v4384_v51  ;;  %v1664_v59 = vsel %vm1663_vm7, %v1661_v55, %v4383_v54 }
 0xdb6   :  { %v1666_v60 = vpack.c.bf16 %v1665_v58, %v1664_v59 }
 0xdb8   :  { %4198 = vmatmul.mubr.msk.bf16.vlgmr.msra.gmra.mrb[12].mxu0 %vm172_vm4, %v1666_v60 }
 0xdb9   :  { %4217 = vmatprep.mubr.msk.bf16.mxu0 %vm4610_vm0, %v4609_v1  ;;  %4210 = vmatpush3.bf16.msra.mxu0 %v4414_v35 }
 0xdba   :  { %4211 = vmatprep.subr.bf16.mxu0 %v4609_v1 }
 0xdbd   :  { %4212 = vmatpush3.bf16.msra.mxu0 %v4415_v36 }
 0xdbe   :  { %4213 = vmatprep.subr.bf16.mxu0 %v4609_v1 }
 0xdc1   :  { %4214 = vmatpush3.bf16.msra.mxu0 %v4416_v37 }
 0xdc2   :  { %4215 = vmatprep.subr.bf16.mxu0 %v4609_v1 }
 0xdc5   :  { %4216 = vmatpush3.bf16.msra.mxu0 %v4417_v38  ;;  %v3923_v38 = vld [vmem:[#allocation5 + $0x5] ss:$0 sm:$0xff] }
 0xdc6   :  { %4239 = vmatprep.subr.mxu0 %v4609_v1 }
 0xe8b   :  { %v1725_v49 = vpop.f32.mrb[12].mxu0 }
 0xe8c   :  { %v1726_v62 = vadd.f32 %v3913_v47, %v1725_v49  ;;  %v4199_v63 = vpop.f32.mrb[13].mxu0 }
 0xe8d   :  { %v1728_v0 = vpop.f32.mrb[14].mxu0 }
 0xe8e   :  { %v1729_v2 = vadd.f32 %v3913_v47, %v1728_v0  ;;  %v4200_v3 = vpop.f32.mrb[15].mxu0  ;;  %v1732_v4 = vadd.f32 %v1726_v62, %v4707_v52 }
 0xe90   :  { %v1736_v5 = vsel %vm172_vm4, %v1732_v4, 0.0  ;;  %v1733_v6 = vadd.f32 %v1729_v2, %v4709_v53  ;;  %v4413_v53 = vld [vmem:[#allocation2 + $0x28] sm:$0xff]  }
 0xe91   :  { %1737 = vadd.xlane.f32.xlu0 %v1736_v5  ;;  %4204 = vmatpush3.bf16.msra.mxu1 %v4413_v53 }
 0xe92   :  { %v1739_v7 = vsel %vm172_vm4, %v1733_v6, 0.0  ;;  %4221 = vmatprep.subr.bf16.mxu1 %v4609_v1 }
 0xe93   :  { %1740 = vadd.xlane.f32.xlu1 %v1739_v7 }
 0xf1e   :  { %v1738_v8 = vpop.xlane.xlu0 %1737 }
 0xf1f   :  { %v1742_v9 = vmul.f32 0.03125, %v1738_v8 }
 0xf20   :  { %v1741_v10 = vpop.xlane.xlu1 %1740 }
 0xf21   :  { %v1744_v11 = vsub.f32 %v1732_v4, %v1742_v9  ;;  %v1743_v13 = vmul.f32 0.03125, %v1741_v10 }
 0xf23   :  { %v1745_v14 = vsub.f32 %v1733_v6, %v1743_v13  ;;  %v1746_v15 = vmul.f32 %v1744_v11, %v1744_v11 }
 0xf25   :  { %v1748_v17 = vsel %vm172_vm4, %v1746_v15, 0.0  ;;  %v1747_v19 = vmul.f32 %v1745_v14, %v1745_v14 }
 0xf26   :  { %1749 = vadd.xlane.f32.xlu0 %v1748_v17 }
 0xf27   :  { %v1751_v52 = vsel %vm172_vm4, %v1747_v19, 0.0 }
 0xf2a   :  { %1752 = vadd.xlane.f32.xlu0 %v1751_v52 }
 0xfb3   :  { %v1750_v21 = vpop.xlane.xlu0 %1749 }
 0xfb4   :  { %v1754_v22 = vmul.f32 0.03125, %v1750_v21 }
 0xfb6   :  { %v1756_v12 = vadd.f32 1e-12, %v1754_v22 }
 0xfb7   :  { %v1753_v23 = vpop.xlane.xlu0 %1752 }
 0xfb8   :  { %4466 = vrsqrt.f32 %v1756_v12  ;;  %v1755_v24 = vmul.f32 0.03125, %v1753_v23 }
 0xfba   :  { %v1757_v25 = vadd.f32 1e-12, %v1755_v24 }
 0xfbc   :  { %4468 = vrsqrt.f32 %v1757_v25 }
 0xfc2   :  { %v4467_v26 = vpop.eup %4466 }
 0xfc3   :  { %v1760_v27 = vmul.f32 %v4467_v26, %v1744_v11 }
 0xfc5   :  { %v1766_v33 = vmul.f32 %v3917_v29, %v1760_v27 }
 0xfc6   :  { %v4469_v32 = vpop.eup %4468 }
 0xfc7   :  { %v1761_v57 = vmul.f32 %v4469_v32, %v1745_v14  ;;  %v4907_v30 = vadd.f32 %v3918_v61, %v1766_v33 }
 0xfc9   :  { %v1767_v28 = vmul.f32 %v3917_v29, %v1761_v57 }
 0xfcb   :  { %v4909_v31 = vadd.f32 %v3918_v61, %v1767_v28 }
 0xfcd   :  { %v1774_v34 = vpack.c.bf16 %v4909_v31, %v4907_v30 }
 0xfcf   :  { %4206 = vmatmul.mubr.msk.bf16.vlgmr.msra.gmra.mrb[28].mxu1 %vm172_vm4, %v1774_v34 }
 0xfd0   :  { %4225 = vmatprep.mubr.msk.bf16.mxu1 %vm4610_vm0, %v4609_v1 }
0x10a2   :  { %v1833_v40 = vpop.f32.mrb[28].mxu1 }
0x10a3   :  { %v1834_v41 = vadd.f32 %v3919_v39, %v1833_v40  ;;  %v4207_v42 = vpop.f32.mrb[29].mxu1 }
0x10a4   :  { %v1836_v43 = vpop.f32.mrb[30].mxu1 }
0x10a5   :  { %v1842_v44 = vmul.f32 0.70710677, %v1834_v41  ;;  %v1837_v45 = vadd.f32 %v3919_v39, %v1836_v43  ;;  %v4208_v46 = vpop.f32.mrb[31].mxu1  ;;  %v1840_v61 = vmul.f32 0.5, %v1834_v41 }
0x10a7   :  { %v1844_v48 = vand.u32 2147483647, %v1842_v44  ;;  %v1843_v50 = vmul.f32 0.70710677, %v1837_v45  ;;  %vm1882_vm8 = vcmp.ge.f32.partialorder %v1842_v44, 0.0  ;;  %v1841_v28 = vmul.f32 0.5, %v1837_v45 }
0x10a9   :  { %v1846_v51 = vmul.f32 0.3275911, %v1844_v48  ;;  %v1845_v54 = vand.u32 2147483647, %v1843_v50  ;;  %v1870_v59 = vsub.f32 0.0, %v1844_v48  ;;  %vm1883_vm9 = vcmp.ge.f32.partialorder %v1843_v50, 0.0 }
0x10ab   :  { %v1848_v55 = vadd.f32 1.0, %v1846_v51  ;;  %v1847_v56 = vmul.f32 0.3275911, %v1845_v54  ;;  %v1871_v60 = vsub.f32 0.0, %v1845_v54  ;;  %v1872_v49 = vmul.f32 %v1870_v59, %v1844_v48 }
0x10ad   :  { %4470 = vrcp.f32 %v1848_v55  ;;  %v1849_v58 = vadd.f32 1.0, %v1847_v56  ;;  %v1873_v2 = vmul.f32 %v1871_v60, %v1845_v54  ;;  %v1874_v3 = vmul.f32 1.442695, %v1872_v49 }
0x10af   :  { %4472 = vrcp.f32 %v1849_v58  ;;  %v1876_v8 = vmul.f32 1.442695, %v1873_v2 }
0x10b0   :  { %4474 = vpow2.f32 %v1874_v3 }
0x10b1   :  { %4476 = vpow2.f32 %v1876_v8 }
0x10b7   :  { %v4471_v47 = vpop.eup %4470 }
0x10b8   :  { %v1852_v62 = vmul.f32 1.0614054, %v4471_v47 }
0x10b9   :  { %v4473_v63 = vpop.eup %4472 }
0x10ba   :  { %v1854_v0 = vadd.f32 -1.4531521, %v1852_v62  ;;  %v1853_v4 = vmul.f32 1.0614054, %v4473_v63  ;;  %v4475_v53 = vpop.eup %4474  ;;  %v4418_v62 = vld [vmem:[#allocation2 + $0x50] sm:$0xff]  }
0x10bb   :  { %v4477_v23 = vpop.eup %4476  ;;  %4222 = vmatpush3.bf16.msra.mxu1 %v4418_v62 }
0x10bc   :  { %v1856_v5 = vmul.f32 %v4471_v47, %v1854_v0  ;;  %v1855_v6 = vadd.f32 -1.4531521, %v1853_v4  ;;  %4223 = vmatprep.subr.bf16.mxu1 %v4609_v1 }
0x10be   :  { %v1858_v7 = vadd.f32 1.4214138, %v1856_v5  ;;  %v1857_v9 = vmul.f32 %v4473_v63, %v1855_v6 }
0x10c0   :  { %v1860_v10 = vmul.f32 %v4471_v47, %v1858_v7  ;;  %v1859_v11 = vadd.f32 1.4214138, %v1857_v9  ;;  %v3929_v7 = vld [vmem:[#allocation5 + $0x6] ss:$0 sm:$0xff] }
0x10c2   :  { %v1862_v13 = vadd.f32 -0.28449672, %v1860_v10  ;;  %v1861_v14 = vmul.f32 %v4473_v63, %v1859_v11 }
0x10c4   :  { %v1864_v15 = vmul.f32 %v4471_v47, %v1862_v13  ;;  %v1863_v17 = vadd.f32 -0.28449672, %v1861_v14  ;;  %v3930_v13 = vld [vmem:[#allocation5 + $0x7] ss:$0 sm:$0xff] }
0x10c6   :  { %v1866_v19 = vadd.f32 0.2548296, %v1864_v15  ;;  %v1865_v52 = vmul.f32 %v4473_v63, %v1863_v17 }
0x10c8   :  { %v1868_v20 = vmul.f32 %v4471_v47, %v1866_v19  ;;  %v1867_v21 = vadd.f32 0.2548296, %v1865_v52  ;;  %v3931_v52 = vld [vmem:[#allocation5 + $0x8] ss:$0 sm:$0xff] }
0x10ca   :  { %v1878_v22 = vmul.f32 %v4475_v53, %v1868_v20  ;;  %v1869_v12 = vmul.f32 %v4473_v63, %v1867_v21 }
0x10cc   :  { %v1880_v24 = vsub.f32 1.0, %v1878_v22  ;;  %v1879_v25 = vmul.f32 %v4477_v23, %v1869_v12 }
0x10ce   :  { %v1884_v26 = vsub.f32 0.0, %v1880_v24  ;;  %v1881_v27 = vsub.f32 1.0, %v1879_v25 }
0x10d0   :  { %v1886_v29 = vsel %vm1882_vm8, %v1880_v24, %v1884_v26  ;;  %v1885_v32 = vsub.f32 0.0, %v1881_v27 }
0x10d1   :  { %v1888_v33 = vadd.f32 1.0, %v1886_v29 }
0x10d2   :  { %v1887_v57 = vsel %vm1883_vm9, %v1881_v27, %v1885_v32 }
0x10d3   :  { %v1889_v34 = vadd.f32 1.0, %v1887_v57  ;;  %v1890_v35 = vmul.f32 %v1888_v33, %v1840_v61 }
0x10d5   :  { %v1891_v36 = vmul.f32 %v1889_v34, %v1841_v28 }
0x10d7   :  { %v1892_v37 = vpack.c.bf16 %v1891_v36, %v1890_v35 }
0x10d9   :  { %4218 = vmatmul.mubr.msk.bf16.vlgmr.msra.gmra.mrb[16].mxu0 %vm1930_vm10, %v1892_v37 }
0x10da   :  { %4241 = vmatprep.mubr.msk.f32.mxu0 %vm4610_vm0, %v4609_v1 }
0x11ac   :  { %v1968_v39 = vpop.f32.mrb[16].mxu0 }
0x11ad   :  { %v1969_v40 = vadd.f32 %v3923_v38, %v1968_v39  ;;  %v4219_v42 = vpop.f32.mrb[17].mxu0 }
0x11ae   :  { %v1971_v43 = vpop.f32.mrb[18].mxu0 }
0x11af   :  { %v1972_v44 = vadd.f32 %v3923_v38, %v1971_v43  ;;  %v4220_v46 = vpop.f32.mrb[19].mxu0  ;;  %v1975_v41 = vadd.f32 %v1969_v40, %v4907_v30 }
0x11b1   :  { %v1979_v45 = vsel %vm172_vm4, %v1975_v41, 0.0  ;;  %v1976_v48 = vadd.f32 %v1972_v44, %v4909_v31  ;;  %v4419_v31 = vld [vmem:[#allocation2 + $0x58] sm:$0xff]  }
0x11b2   :  { %1980 = vadd.xlane.f32.xlu1 %v1979_v45  ;;  %4224 = vmatpush3.bf16.msra.mxu1 %v4419_v31 }
0x11b3   :  { %v1982_v50 = vsel %vm172_vm4, %v1976_v48, 0.0  ;;  %4229 = vmatprep.subr.mxu1 %v4609_v1 }
0x11b4   :  { %1983 = vadd.xlane.f32.xlu0 %v1982_v50 }
0x123f   :  { %v1981_v51 = vpop.xlane.xlu1 %1980 }
0x1240   :  { %v1985_v54 = vmul.f32 0.03125, %v1981_v51 }
0x1241   :  { %v1984_v55 = vpop.xlane.xlu0 %1983 }
0x1242   :  { %v1987_v56 = vsub.f32 %v1975_v41, %v1985_v54  ;;  %v1986_v58 = vmul.f32 0.03125, %v1984_v55 }
0x1244   :  { %v1988_v59 = vsub.f32 %v1976_v48, %v1986_v58  ;;  %v1989_v60 = vmul.f32 %v1987_v56, %v1987_v56 }
0x1246   :  { %v1991_v47 = vsel %vm172_vm4, %v1989_v60, 0.0  ;;  %v1990_v49 = vmul.f32 %v1988_v59, %v1988_v59 }
0x1247   :  { %1992 = vadd.xlane.f32.xlu1 %v1991_v47 }
0x1248   :  { %v1994_v30 = vsel %vm172_vm4, %v1990_v49, 0.0 }
0x1249   :  { %1995 = vadd.xlane.f32.xlu0 %v1994_v30 }
0x12d4   :  { %v1993_v63 = vpop.xlane.xlu1 %1992 }
0x12d5   :  { %v1997_v0 = vmul.f32 0.03125, %v1993_v63 }
0x12d6   :  { %v1996_v2 = vpop.xlane.xlu0 %1995 }
0x12d7   :  { %v1999_v3 = vadd.f32 1e-12, %v1997_v0  ;;  %v1998_v4 = vmul.f32 0.03125, %v1996_v2 }
0x12d9   :  { %4478 = vrsqrt.f32 %v1999_v3  ;;  %v2000_v5 = vadd.f32 1e-12, %v1998_v4 }
0x12db   :  { %4480 = vrsqrt.f32 %v2000_v5 }
0x12e3   :  { %v4479_v6 = vpop.eup %4478 }
0x12e4   :  { %v2003_v8 = vmul.f32 %v4479_v6, %v1987_v56 }
0x12e5   :  { %v4481_v9 = vpop.eup %4480 }
0x12e6   :  { %v2009_v10 = vmul.f32 %v3929_v7, %v2003_v8  ;;  %v2004_v11 = vmul.f32 %v4481_v9, %v1988_v59 }
0x12e8   :  { %v2010_v14 = vmul.f32 %v3929_v7, %v2004_v11  ;;  %v4931_v15 = vadd.f32 %v3930_v13, %v2009_v10 }
0x12ea   :  { %v4933_v17 = vadd.f32 %v3930_v13, %v2010_v14 }
0x12ec   :  { %v2017_v19 = vpack.c.bf16 %v4933_v17, %v4931_v15 }
0x12ee   :  { %4226 = vmatmul.mubr.msk.bf16.vlgmr.msra.gmra.mrb[32].mxu1 %vm172_vm4, %v2017_v19 }
0x12ef   :  { %4231 = vmatprep.mubr.msk.f32.mxu1 %vm4610_vm0, %v4609_v1 }
0x13c1   :  { %v2076_v20 = vpop.f32.mrb[32].mxu1 }
0x13c2   :  { %v4940_v53 = vadd.f32 %v3931_v52, %v2076_v20  ;;  %v4227_v21 = vpop.f32.mrb[33].mxu1 }
0x13c3   :  { %v2079_v22 = vpop.f32.mrb[34].mxu1 }
0x13c4   :  { %v4942_v12 = vadd.f32 %v3931_v52, %v2079_v22  ;;  %2084 = vrot.lane.b32.xlu1 %v4940_v53, %s4612_s0  ;;  %v4228_v23 = vpop.f32.mrb[35].mxu1 }
0x13c6   :  { %2161 = vrot.lane.b32.xlu0 %v4942_v12, %s4612_s0 }
0x1436   :  { %v2085_v24 = vpop.permute.xlu1 %2084 }
0x1437   :  { %4230 = vmatpush3.xpose.msk.msra.mxu1 %vm318_vm5, %v2085_v24 }
0x1438   :  { %4234 = vmatprep.subr.mxu1 %v4609_v1  ;;  %v2162_v25 = vpop.permute.xlu0 %2161 }
0x143a   :  { %4232 = vmatmul.mubr.msk.f32.vlgmr.msra.gmra.mrb[36].mxu1 %vm318_vm5, %v4940_v53 }
0x143b   :  { %4235 = vmatpush3.xpose.msk.msra.mxu1 %vm318_vm5, %v2162_v25  ;;  %4236 = vmatprep.mubr.msk.f32.mxu1 %vm4610_vm0, %v4609_v1 }
0x143c   :  { %4244 = vmatprep.subr.mxu1 %v4609_v1 }
0x143e   :  { %4237 = vmatmul.mubr.msk.f32.vlgmr.msra.gmra.mrb[38].mxu1 %vm318_vm5, %v4942_v12 }
0x143f   :  { %4246 = vmatprep.mubr.msk.f32.mxu1 %vm4610_vm0, %v4609_v1 }
0x150d   :  { %v2156_v26 = vpop.f32.mrb[36].mxu1 }
0x150e   :  { %v2157_v27 = vadd.f32 %v2156_v26, %v4740_v16  ;;  %v4233_v29 = vpop.f32.mrb[37].mxu1 }
0x1510   :  { %v2237_v32 = vsel %vm318_vm5, %v2157_v27, -inf }
0x1511   :  { %2238 = vmax.xlane.f32.xlu1 %v2237_v32  ;;  %v2233_v33 = vpop.f32.mrb[38].mxu1 }
0x1512   :  { %v2234_v57 = vadd.f32 %v2233_v33, %v4742_v18  ;;  %v4238_v61 = vpop.f32.mrb[39].mxu1 }
0x1514   :  { %v2240_v28 = vsel %vm318_vm5, %v2234_v57, -inf }
0x1515   :  { %2241 = vmax.xlane.f32.xlu0 %v2240_v28 }
0x1522   :  { %2259 = vrot.lane.b32.xlu1 %v4940_v53, %s4603_s25 }
0x1526   :  { %2413 = vrot.lane.b32.xlu1 %v4940_v53, %s4614_s1 }
0x152a   :  { %2491 = vrot.lane.b32.xlu1 %v4942_v12, %s4614_s1 }
0x152b   :  { %2335 = vrot.lane.b32.xlu0 %v4942_v12, %s4603_s25  ;;  %s4625_s25 = smov [#allocation7]  }
0x152c   :  { %s3863_s6 = sshll.u32 %s4625_s25, 4  ;;  %s3864_s6 = int_to_ptr.vmem [resolvable:$true] %s3863_s6 }
0x152d   :  { %s4574_s7 = scalar_lea.vmem %s3864_s6, 32  ;;  %p4579_p3 = scmp.lt.s32.totalorder %s3864_s6, %s3864_s6 }
0x152e   :  { %p4575_p2 = scmp.ne.s32.totalorder %s3864_s6, %s4574_s7  ;;  %p4580_p4 = scmp.lt.s32.totalorder %s4574_s7, %s4574_s7 }
0x1530   :  { %p4581_p5 = por %p4580_p4, %p4579_p3 }
0x1532   :  { %p4582_p6 = pnand %p4581_p5, %p4575_p2 }
0x159e   :  { %v2239_v34 = vpop.xlane.xlu1 %2238 }
0x159f   :  { %v2243_v35 = vsub.f32 %v2157_v27, %v2239_v34 }
0x15a1   :  { %v2245_v36 = vmul.f32 1.442695, %v2243_v35 }
0x15a2   :  { %v2260_v37 = vpop.permute.xlu1 %2259  ;;  %v2242_v38 = vpop.xlane.xlu0 %2241 }
0x15a3   :  { %4482 = vpow2.f32 %v2245_v36  ;;  %v2244_v39 = vsub.f32 %v2234_v57, %v2242_v38  ;;  %4240 = vmatpush3.msra.mxu0 %v2260_v37 }
0x15a4   :  { %4249 = vmatprep.subr.mxu0 %v4609_v1 }
0x15a5   :  { %v2247_v40 = vmul.f32 1.442695, %v2244_v39 }
0x15a6   :  { %v2336_v42 = vpop.permute.xlu0 %2335  ;;  %v2414_v45 = vpop.permute.xlu1 %2413 }
0x15a7   :  { %4484 = vpow2.f32 %v2247_v40  ;;  %4245 = vmatpush3.msra.mxu1 %v2336_v42 }
0x15a8   :  { %4254 = vmatprep.subr.mxu1 %v4609_v1 }
0x15aa   :  { %v2492_v48 = vpop.permute.xlu1 %2491 }
0x15ad   :  { %v4483_v43 = vpop.eup %4482 }
0x15ae   :  { %v2249_v44 = vsel %vm318_vm5, %v4483_v43, 0.0 }
0x15af   :  { %2250 = vadd.xlane.f32.xlu1 %v2249_v44 }
0x15b1   :  { %v4485_v46 = vpop.eup %4484 }
0x15b2   :  { %v2252_v41 = vsel %vm318_vm5, %v4485_v46, 0.0 }
0x15b3   :  { %2253 = vadd.xlane.f32.xlu0 %v2252_v41 }
0x15c0   :  { %2489 = vrot.lane.b32.xlu1 %v4942_v12, %s4615_s21 }
0x15c9   :  { %2411 = vrot.lane.b32.xlu0 %v4940_v53, %s4615_s21 }
0x163c   :  { %v2251_v50 = vpop.xlane.xlu1 %2250 }
0x163d   :  { %4486 = vrcp.f32 %v2251_v50 }
0x1640   :  { %v2254_v51 = vpop.xlane.xlu0 %2253  ;;  %v2490_v60 = vpop.permute.xlu1 %2489 }
0x1641   :  { %4488 = vrcp.f32 %v2254_v51 }
0x1644   :  { %v2412_v59 = vpop.permute.xlu0 %2411 }
0x1647   :  { %v4487_v54 = vpop.eup %4486 }
0x1648   :  { %v2257_v55 = vmul.f32 %v4487_v54, %v4483_v43 }
0x164a   :  { %4242 = vmatmul.mubr.msk.f32.vlgmr.msra.gmra.mrb[20].mxu0 %vm318_vm5, %v2257_v55 }
0x164b   :  { %v4489_v56 = vpop.eup %4488  ;;  %4250 = vmatpush3.xpose.msk.msra.mxu0 %vm318_vm5, %v2414_v45  ;;  %4251 = vmatprep.mubr.msk.f32.mxu0 %vm4610_vm0, %v4609_v1 }
0x164c   :  { %v2258_v58 = vmul.f32 %v4489_v56, %v4485_v46  ;;  %4259 = vmatprep.subr.mxu0 %v4609_v1 }
0x164e   :  { %4247 = vmatmul.mubr.msk.f32.vlgmr.msra.gmra.mrb[40].mxu1 %vm318_vm5, %v2258_v58  ;;  %4252 = vmatmul.mubr.msk.f32.vlgmr.msra.gmra.mrb[22].mxu0 %vm318_vm5, %v2412_v59 }
0x164f   :  { %4255 = vmatpush3.xpose.msk.msra.mxu1 %vm318_vm5, %v2492_v48  ;;  %4256 = vmatprep.mubr.msk.f32.mxu1 %vm4610_vm0, %v4609_v1 }
0x1650   :  { %4264 = vmatprep.subr.mxu1 %v4609_v1  ;;  %4261 = vmatprep.mubr.msk.f32.mxu0 %vm4610_vm0, %v4609_v1 }
0x1652   :  { %4257 = vmatmul.mubr.msk.f32.vlgmr.msra.gmra.mrb[42].mxu1 %vm318_vm5, %v2490_v60 }
0x1653   :  { %4266 = vmatprep.mubr.msk.f32.mxu1 %vm4610_vm0, %v4609_v1 }
0x171d   :  { %v4996_v47 = vpop.f32.mrb[20].mxu0 }
0x171e   :  { %v4243_v49 = vpop.f32.mrb[21].mxu0 }
0x1721   :  { %v4998_v30 = vpop.f32.mrb[40].mxu1  ;;  %v2485_v62 = vpop.f32.mrb[22].mxu0 }
0x1722   :  { %v2486_v31 = vadd.f32 %v2485_v62, %v4740_v16  ;;  %v4248_v63 = vpop.f32.mrb[41].mxu1  ;;  %v4253_v0 = vpop.f32.mrb[23].mxu0 }
0x1724   :  { %v2567_v2 = vsel %vm318_vm5, %v2486_v31, -inf }
0x1725   :  { %v2563_v3 = vpop.f32.mrb[42].mxu1  ;;  %2568 = vmax.xlane.f32.xlu0 %v2567_v2 }
0x1726   :  { %v2564_v4 = vadd.f32 %v2563_v3, %v4742_v18  ;;  %v4258_v5 = vpop.f32.mrb[43].mxu1 }
0x1728   :  { %v2570_v6 = vsel %vm318_vm5, %v2564_v4, -inf }
0x1729   :  { %2571 = vmax.xlane.f32.xlu1 %v2570_v6 }
0x173a   :  { %2589 = vrot.lane.b32.xlu1 %v4940_v53, %s4616_s22 }
0x173b   :  { %2665 = vrot.lane.b32.xlu0 %v4942_v12, %s4616_s22 }
0x173e   :  { %2743 = vrot.lane.b32.xlu1 %v4940_v53, %s4617_s23 }
0x1742   :  { %2821 = vrot.lane.b32.xlu1 %v4942_v12, %s4617_s23 }
0x1746   :  { %2819 = vrot.lane.b32.xlu1 %v4942_v12, %s4618_s24 }
0x17b2   :  { %v2569_v7 = vpop.xlane.xlu0 %2568 }
0x17b3   :  { %v2573_v8 = vsub.f32 %v2486_v31, %v2569_v7 }
0x17b5   :  { %v2575_v9 = vmul.f32 1.442695, %v2573_v8 }
0x17b6   :  { %v2572_v10 = vpop.xlane.xlu1 %2571  ;;  %v2666_v11 = vpop.permute.xlu0 %2665 }
0x17b7   :  { %4490 = vpow2.f32 %v2575_v9  ;;  %v2574_v13 = vsub.f32 %v2564_v4, %v2572_v10  ;;  %4265 = vmatpush3.msra.mxu1 %v2666_v11 }
0x17b8   :  { %4274 = vmatprep.subr.mxu1 %v4609_v1 }
0x17b9   :  { %v2577_v14 = vmul.f32 1.442695, %v2574_v13 }
0x17ba   :  { %v2590_v19 = vpop.permute.xlu1 %2589 }
0x17bb   :  { %4492 = vpow2.f32 %v2577_v14  ;;  %4260 = vmatpush3.msra.mxu0 %v2590_v19 }
0x17bc   :  { %4269 = vmatprep.subr.mxu0 %v4609_v1 }
0x17be   :  { %v2744_v25 = vpop.permute.xlu1 %2743 }
0x17c1   :  { %v4491_v52 = vpop.eup %4490 }
0x17c2   :  { %v2579_v20 = vsel %vm318_vm5, %v4491_v52, 0.0  ;;  %v2822_v32 = vpop.permute.xlu1 %2821 }
0x17c3   :  { %2580 = vadd.xlane.f32.xlu0 %v2579_v20 }
0x17c5   :  { %v4493_v21 = vpop.eup %4492 }
0x17c6   :  { %v2582_v22 = vsel %vm318_vm5, %v4493_v21, 0.0  ;;  %v2820_v61 = vpop.permute.xlu1 %2819 }
0x17c7   :  { %2583 = vadd.xlane.f32.xlu0 %v2582_v22 }
0x17dd   :  { %2741 = vrot.lane.b32.xlu0 %v4940_v53, %s4618_s24 }
0x1850   :  { %v2581_v23 = vpop.xlane.xlu0 %2580 }
0x1851   :  { %4494 = vrcp.f32 %v2581_v23 }
0x1854   :  { %v2584_v24 = vpop.xlane.xlu0 %2583 }
0x1855   :  { %4496 = vrcp.f32 %v2584_v24 }
0x1858   :  { %v2742_v57 = vpop.permute.xlu0 %2741 }
0x185b   :  { %v4495_v26 = vpop.eup %4494 }
0x185c   :  { %v2587_v27 = vmul.f32 %v4495_v26, %v4491_v52 }
0x185e   :  { %4262 = vmatmul.mubr.msk.f32.vlgmr.msra.gmra.mrb[24].mxu0 %vm318_vm5, %v2587_v27 }
0x185f   :  { %v4497_v29 = vpop.eup %4496  ;;  %4270 = vmatpush3.xpose.msk.msra.mxu0 %vm318_vm5, %v2744_v25  ;;  %4271 = vmatprep.mubr.msk.f32.mxu0 %vm4610_vm0, %v4609_v1 }
0x1860   :  { %v2588_v33 = vmul.f32 %v4497_v29, %v4493_v21  ;;  %4279 = vmatprep.subr.mxu0 %v4609_v1 }
0x1862   :  { %4267 = vmatmul.mubr.msk.f32.vlgmr.msra.gmra.mrb[44].mxu1 %vm318_vm5, %v2588_v33  ;;  %4272 = vmatmul.mubr.msk.f32.vlgmr.msra.gmra.mrb[26].mxu0 %vm318_vm5, %v2742_v57 }
0x1863   :  { %4275 = vmatpush3.xpose.msk.msra.mxu1 %vm318_vm5, %v2822_v32  ;;  %4276 = vmatprep.mubr.msk.f32.mxu1 %vm4610_vm0, %v4609_v1 }
0x1864   :  { %4284 = vmatprep.subr.mxu1 %v4609_v1  ;;  %4281 = vmatprep.mubr.msk.f32.mxu0 %vm4610_vm0, %v4609_v1 }
0x1866   :  { %4277 = vmatmul.mubr.msk.f32.vlgmr.msra.gmra.mrb[46].mxu1 %vm318_vm5, %v2820_v61 }
0x1867   :  { %4286 = vmatprep.mubr.msk.f32.mxu1 %vm4610_vm0, %v4609_v1 }
0x1931   :  { %v5036_v28 = vpop.f32.mrb[24].mxu0 }
0x1932   :  { %v4263_v34 = vpop.f32.mrb[25].mxu0 }
0x1935   :  { %v5038_v35 = vpop.f32.mrb[44].mxu1  ;;  %v2815_v36 = vpop.f32.mrb[26].mxu0 }
0x1936   :  { %v4385_v37 = vpack.i.bf16 %v5038_v35, %v5036_v28  ;;  %v2816_v38 = vadd.f32 %v2815_v36, %v4740_v16  ;;  %v4268_v39 = vpop.f32.mrb[45].mxu1  ;;  %v4273_v40 = vpop.f32.mrb[27].mxu0 }
0x1938   :  { %v2897_v42 = vsel %vm318_vm5, %v2816_v38, -inf }
0x1939   :  { %v2893_v43 = vpop.f32.mrb[46].mxu1  ;;  %2898 = vmax.xlane.f32.xlu0 %v2897_v42  ;;  %v4421_v42 = vld [vmem:[#allocation2 + $0x68] sm:$0xff]  }
0x193a   :  { %v2894_v44 = vadd.f32 %v2893_v43, %v4742_v18  ;;  %v4278_v46 = vpop.f32.mrb[47].mxu1 }
0x193c   :  { %v2900_v41 = vsel %vm318_vm5, %v2894_v44, -inf }
0x193d   :  { %2901 = vmax.xlane.f32.xlu1 %v2900_v41 }
0x194e   :  { %2919 = vrot.lane.b32.xlu1 %v4940_v53, %s4619_s26 }
0x194f   :  { %2995 = vrot.lane.b32.xlu0 %v4942_v12, %s4619_s26 }
0x1952   :  { %3073 = vrot.lane.b32.xlu1 %v4940_v53, %s4620_s27 }
0x1956   :  { %3151 = vrot.lane.b32.xlu1 %v4942_v12, %s4620_s27 }
0x195a   :  { %3149 = vrot.lane.b32.xlu1 %v4942_v12, %s4621_s28 }
0x19c6   :  { %v2899_v45 = vpop.xlane.xlu0 %2898 }
0x19c7   :  { %v2903_v48 = vsub.f32 %v2816_v38, %v2899_v45 }
0x19c9   :  { %v2905_v50 = vmul.f32 1.442695, %v2903_v48 }
0x19ca   :  { %v2902_v51 = vpop.xlane.xlu1 %2901  ;;  %v2996_v54 = vpop.permute.xlu0 %2995 }
0x19cb   :  { %4498 = vpow2.f32 %v2905_v50  ;;  %v2904_v55 = vsub.f32 %v2894_v44, %v2902_v51  ;;  %4285 = vmatpush3.msra.mxu1 %v2996_v54 }
0x19cc   :  { %4294 = vmatprep.subr.mxu1 %v4609_v1 }
0x19cd   :  { %v2907_v56 = vmul.f32 1.442695, %v2904_v55 }
0x19ce   :  { %v2920_v58 = vpop.permute.xlu1 %2919 }
0x19cf   :  { %4500 = vpow2.f32 %v2907_v56  ;;  %4280 = vmatpush3.msra.mxu0 %v2920_v58 }
0x19d0   :  { %4289 = vmatprep.subr.mxu0 %v4609_v1 }
0x19d2   :  { %v3074_v0 = vpop.permute.xlu1 %3073 }
0x19d5   :  { %v4499_v59 = vpop.eup %4498 }
0x19d6   :  { %v2909_v60 = vsel %vm318_vm5, %v4499_v59, 0.0  ;;  %v3152_v5 = vpop.permute.xlu1 %3151 }
0x19d7   :  { %2910 = vadd.xlane.f32.xlu0 %v2909_v60 }
0x19d9   :  { %v4501_v49 = vpop.eup %4500 }
0x19da   :  { %v2912_v62 = vsel %vm318_vm5, %v4501_v49, 0.0  ;;  %v3150_v8 = vpop.permute.xlu1 %3149 }
0x19db   :  { %2913 = vadd.xlane.f32.xlu0 %v2912_v62 }
0x19f1   :  { %3071 = vrot.lane.b32.xlu0 %v4940_v53, %s4621_s28 }
0x1a64   :  { %v2911_v31 = vpop.xlane.xlu0 %2910 }
0x1a65   :  { %4502 = vrcp.f32 %v2911_v31 }
0x1a68   :  { %v2914_v63 = vpop.xlane.xlu0 %2913 }
0x1a69   :  { %4504 = vrcp.f32 %v2914_v63 }
0x1a6c   :  { %v3072_v7 = vpop.permute.xlu0 %3071 }
0x1a6f   :  { %v4503_v2 = vpop.eup %4502 }
0x1a70   :  { %v2917_v3 = vmul.f32 %v4503_v2, %v4499_v59 }
0x1a72   :  { %4282 = vmatmul.mubr.msk.f32.vlgmr.msra.gmra.mrb[28].mxu0 %vm318_vm5, %v2917_v3 }
0x1a73   :  { %v4505_v4 = vpop.eup %4504  ;;  %4290 = vmatpush3.xpose.msk.msra.mxu0 %vm318_vm5, %v3074_v0  ;;  %4291 = vmatprep.mubr.msk.f32.mxu0 %vm4610_vm0, %v4609_v1 }
0x1a74   :  { %v2918_v6 = vmul.f32 %v4505_v4, %v4501_v49  ;;  %4299 = vmatprep.subr.mxu0 %v4609_v1 }
0x1a76   :  { %4287 = vmatmul.mubr.msk.f32.vlgmr.msra.gmra.mrb[48].mxu1 %vm318_vm5, %v2918_v6  ;;  %4292 = vmatmul.mubr.msk.f32.vlgmr.msra.gmra.mrb[30].mxu0 %vm318_vm5, %v3072_v7 }
0x1a77   :  { %4295 = vmatpush3.xpose.msk.msra.mxu1 %vm318_vm5, %v3152_v5  ;;  %4296 = vmatprep.mubr.msk.f32.mxu1 %vm4610_vm0, %v4609_v1 }
0x1a78   :  { %4304 = vmatprep.subr.mxu1 %v4609_v1  ;;  %4301 = vmatprep.mubr.msk.f32.mxu0 %vm4610_vm0, %v4609_v1 }
0x1a7a   :  { %4297 = vmatmul.mubr.msk.f32.vlgmr.msra.gmra.mrb[50].mxu1 %vm318_vm5, %v3150_v8 }
0x1a7b   :  { %4306 = vmatprep.mubr.msk.f32.mxu1 %vm4610_vm0, %v4609_v1 }
0x1b45   :  { %v2991_v9 = vpop.f32.mrb[28].mxu0 }
0x1b46   :  { %v4283_v10 = vpop.f32.mrb[29].mxu0 }
0x1b49   :  { %v3067_v11 = vpop.f32.mrb[48].mxu1  ;;  %v3145_v13 = vpop.f32.mrb[30].mxu0 }
0x1b4a   :  { %v4390_v14 = vpack.i.bf16 %v3067_v11, %v2991_v9  ;;  %v3146_v19 = vadd.f32 %v3145_v13, %v4740_v16  ;;  %v4288_v52 = vpop.f32.mrb[49].mxu1  ;;  %v4293_v20 = vpop.f32.mrb[31].mxu0 }
0x1b4c   :  { %v3227_v21 = vsel %vm318_vm5, %v3146_v19, -inf }
0x1b4d   :  { %v3223_v22 = vpop.f32.mrb[50].mxu1  ;;  %3228 = vmax.xlane.f32.xlu0 %v3227_v21 }
0x1b4e   :  { %v3224_v23 = vadd.f32 %v3223_v22, %v4742_v18  ;;  %v4298_v24 = vpop.f32.mrb[51].mxu1 }
0x1b50   :  { %v3230_v25 = vsel %vm318_vm5, %v3224_v23, -inf }
0x1b51   :  { %3231 = vmax.xlane.f32.xlu1 %v3230_v25 }
0x1b62   :  { %3249 = vrot.lane.b32.xlu1 %v4940_v53, %s4622_s29 }
0x1b66   :  { %4386 = vrot.lane.b32.xlu1 %v4385_v37, %s4607_s13 }
0x1b6a   :  { %4391 = vrot.lane.b32.xlu1 %v4390_v14, %s4623_s30 }
0x1bda   :  { %v3229_v16 = vpop.xlane.xlu0 %3228 }
0x1bdb   :  { %v3233_v26 = vsub.f32 %v3146_v19, %v3229_v16  ;;  %v4423_v16 = vld [vmem:[#allocation2 + $0x78] sm:$0xff]  }
0x1bdd   :  { %v3235_v27 = vmul.f32 1.442695, %v3233_v26 }
0x1bde   :  { %v3232_v29 = vpop.xlane.xlu1 %3231 }
0x1bdf   :  { %4506 = vpow2.f32 %v3235_v27  ;;  %v3234_v18 = vsub.f32 %v3224_v23, %v3232_v29 }
0x1be1   :  { %v3237_v32 = vmul.f32 1.442695, %v3234_v18 }
0x1be2   :  { %v3250_v33 = vpop.permute.xlu1 %3249 }
0x1be3   :  { %4508 = vpow2.f32 %v3237_v32  ;;  %4300 = vmatpush3.msra.mxu0 %v3250_v33 }
0x1be4   :  { %4309 = vmatprep.subr.bf16.mxu0 %v4609_v1 }
0x1be6   :  { %v4387_v48 = vpop.permute.xlu1 %4386 }
0x1be7   :  { %v4389_v51 = vunpack.i.h.bf16 %v4387_v48  ;;  %v4388_v54 = vunpack.i.l.bf16 %v4387_v48 }
0x1be9   :  { %v4507_v53 = vpop.eup %4506  ;;  %v3426_v59 = vsel %vm318_vm5, %v4998_v30, %v4389_v51  ;;  %v3425_v60 = vsel %vm318_vm5, %v4996_v47, %v4388_v54  ;;  %v3959_v30 = vld [vmem:[#allocation5 + $0x9] ss:$0 sm:$0xff] }
0x1bea   :  { %v3239_v57 = vsel %vm318_vm5, %v4507_v53, 0.0  ;;  %v4392_v50 = vpop.permute.xlu1 %4391 }
0x1beb   :  { %3240 = vadd.xlane.f32.xlu0 %v3239_v57  ;;  %v4394_v55 = vunpack.i.h.bf16 %v4392_v50  ;;  %v4393_v56 = vunpack.i.l.bf16 %v4392_v50  ;;  %v3963_v57 = vld [vmem:[#allocation5 + $0xa] ss:$0 sm:$0xff] }
0x1bed   :  { %v4509_v61 = vpop.eup %4508  ;;  %v3428_v31 = vsel %vm1660_vm6, %v3426_v59, %v4394_v55  ;;  %v3427_v63 = vsel %vm1660_vm6, %v3425_v60, %v4393_v56 }
0x1bee   :  { %v3242_v28 = vsel %vm318_vm5, %v4509_v61, 0.0 }
0x1bef   :  { %3243 = vadd.xlane.f32.xlu0 %v3242_v28 }
0x1c05   :  { %3325 = vrot.lane.b32.xlu0 %v4942_v12, %s4622_s29  ;;  %v4420_v12 = vld [vmem:[#allocation2 + $0x60] sm:$0xff]  }
0x1c78   :  { %v3241_v34 = vpop.xlane.xlu0 %3240 }
0x1c79   :  { %4510 = vrcp.f32 %v3241_v34 }
0x1c7c   :  { %v3244_v35 = vpop.xlane.xlu0 %3243 }
0x1c7d   :  { %4512 = vrcp.f32 %v3244_v35 }
0x1c80   :  { %v3326_v36 = vpop.permute.xlu0 %3325 }
0x1c81   :  { %4305 = vmatpush3.msra.mxu1 %v3326_v36  ;;  %v3964_v36 = vld [vmem:[#allocation5 + $0xb] ss:$0 sm:$0xff] }
0x1c82   :  { %4317 = vmatprep.subr.bf16.mxu1 %v4609_v1 }
0x1c83   :  { %v4511_v37 = vpop.eup %4510 }
0x1c84   :  { %v3247_v38 = vmul.f32 %v4511_v37, %v4507_v53 }
0x1c86   :  { %4302 = vmatmul.mubr.msk.f32.vlgmr.msra.gmra.mrb[32].mxu0 %vm318_vm5, %v3247_v38 }
0x1c87   :  { %v4513_v39 = vpop.eup %4512  ;;  %4313 = vmatprep.mubr.msk.bf16.mxu0 %vm4610_vm0, %v4609_v1  ;;  %4310 = vmatpush3.bf16.msra.mxu0 %v4420_v12  ;;  %v4424_v12 = vld [vmem:[#allocation2 + $0x80] sm:$0xff]  }
0x1c88   :  { %v3248_v40 = vmul.f32 %v4513_v39, %v4509_v61  ;;  %4311 = vmatprep.subr.bf16.mxu0 %v4609_v1 }
0x1c8a   :  { %4307 = vmatmul.mubr.msk.f32.vlgmr.msra.gmra.mrb[52].mxu1 %vm318_vm5, %v3248_v40 }
0x1c8b   :  { %4321 = vmatprep.mubr.msk.bf16.mxu1 %vm4610_vm0, %v4609_v1  ;;  %4312 = vmatpush3.bf16.msra.mxu0 %v4421_v42  ;;  %v4425_v42 = vld [vmem:[#allocation2 + $0x88] sm:$0xff]  }
0x1c8c   :  { %4325 = vmatprep.subr.bf16.mxu0 %v4609_v1 }
0x1d59   :  { %v3321_v43 = vpop.f32.mrb[32].mxu0 }
0x1d5a   :  { %v4303_v44 = vpop.f32.mrb[33].mxu0 }
0x1d5b   :  { %v4427_v44 = vld [vmem:[#allocation2 + $0x98] sm:$0xff]  }
0x1d5d   :  { %v3397_v46 = vpop.f32.mrb[52].mxu1 }
0x1d5e   :  { %v4395_v41 = vpack.i.bf16 %v3397_v46, %v3321_v43  ;;  %v4308_v45 = vpop.f32.mrb[53].mxu1  ;;  %v4426_v43 = vld [vmem:[#allocation2 + $0x90] sm:$0xff]   ;;  %v3965_v46 = vld [vmem:[#allocation5 + $0xc] ss:$0 sm:$0xff] }
0x1d60   :  { %4396 = vrot.lane.b32.xlu0 %v4395_v41, %s4624_s5 }
0x1dd2   :  { %v4397_v58 = vpop.permute.xlu0 %4396 }
0x1dd3   :  { %v4399_v49 = vunpack.i.h.bf16 %v4397_v58  ;;  %v4398_v62 = vunpack.i.l.bf16 %v4397_v58 }
0x1dd5   :  { %v3430_v0 = vsel %vm1663_vm7, %v3428_v31, %v4399_v49  ;;  %v3429_v2 = vsel %vm1663_vm7, %v3427_v63, %v4398_v62 }
0x1dd6   :  { %v3431_v3 = vpack.c.bf16 %v3430_v0, %v3429_v2 }
0x1dd8   :  { %4314 = vmatmul.mubr.msk.bf16.vlgmr.msra.gmra.mrb[36].mxu0 %vm172_vm4, %v3431_v3 }
0x1dd9   :  { %4333 = vmatprep.mubr.msk.bf16.mxu0 %vm4610_vm0, %v4609_v1  ;;  %4326 = vmatpush3.bf16.msra.mxu0 %v4424_v12 }
0x1dda   :  { %4327 = vmatprep.subr.bf16.mxu0 %v4609_v1 }
0x1ddd   :  { %4328 = vmatpush3.bf16.msra.mxu0 %v4425_v42  ;;  %v3969_v42 = vld [vmem:[#allocation5 + $0xd] ss:$0 sm:$0xff] }
0x1dde   :  { %4329 = vmatprep.subr.bf16.mxu0 %v4609_v1 }
0x1de1   :  { %4330 = vmatpush3.bf16.msra.mxu0 %v4426_v43 }
0x1de2   :  { %4331 = vmatprep.subr.bf16.mxu0 %v4609_v1 }
0x1de5   :  { %4332 = vmatpush3.bf16.msra.mxu0 %v4427_v44 }
0x1eab   :  { %v3490_v4 = vpop.f32.mrb[36].mxu0 }
0x1eac   :  { %v3491_v5 = vadd.f32 %v3959_v30, %v3490_v4  ;;  %v4315_v47 = vpop.f32.mrb[37].mxu0 }
0x1ead   :  { %v3493_v6 = vpop.f32.mrb[38].mxu0 }
0x1eae   :  { %v3494_v7 = vadd.f32 %v3959_v30, %v3493_v6  ;;  %v4316_v8 = vpop.f32.mrb[39].mxu0  ;;  %v3497_v9 = vadd.f32 %v3491_v5, %v4931_v15 }
0x1eb0   :  { %v3498_v10 = vadd.f32 %v3494_v7, %v4933_v17  ;;  %v3501_v11 = vsel %vm172_vm4, %v3497_v9, 0.0  ;;  %v4422_v17 = vld [vmem:[#allocation2 + $0x70] sm:$0xff]  }
0x1eb1   :  { %3502 = vadd.xlane.f32.xlu1 %v3501_v11  ;;  %4318 = vmatpush3.bf16.msra.mxu1 %v4422_v17 }
0x1eb2   :  { %v3504_v13 = vsel %vm172_vm4, %v3498_v10, 0.0  ;;  %4319 = vmatprep.subr.bf16.mxu1 %v4609_v1 }
0x1eb3   :  { %3505 = vadd.xlane.f32.xlu0 %v3504_v13 }
0x1eb5   :  { %4320 = vmatpush3.bf16.msra.mxu1 %v4423_v16 }
0x1eb6   :  { %4337 = vmatprep.subr.bf16.mxu1 %v4609_v1 }
0x1f3e   :  { %v3503_v14 = vpop.xlane.xlu1 %3502 }
0x1f3f   :  { %v3507_v19 = vmul.f32 0.03125, %v3503_v14 }
0x1f40   :  { %v3506_v52 = vpop.xlane.xlu0 %3505 }
0x1f41   :  { %v3509_v20 = vsub.f32 %v3497_v9, %v3507_v19  ;;  %v3508_v21 = vmul.f32 0.03125, %v3506_v52 }
0x1f43   :  { %v3510_v22 = vsub.f32 %v3498_v10, %v3508_v21  ;;  %v3511_v23 = vmul.f32 %v3509_v20, %v3509_v20 }
0x1f45   :  { %v3513_v24 = vsel %vm172_vm4, %v3511_v23, 0.0  ;;  %v3512_v25 = vmul.f32 %v3510_v22, %v3510_v22 }
0x1f46   :  { %3514 = vadd.xlane.f32.xlu0 %v3513_v24 }
0x1f47   :  { %v3516_v15 = vsel %vm172_vm4, %v3512_v25, 0.0 }
0x1f48   :  { %3517 = vadd.xlane.f32.xlu1 %v3516_v15 }
0x1fd3   :  { %v3515_v26 = vpop.xlane.xlu0 %3514 }
0x1fd4   :  { %v3519_v27 = vmul.f32 0.03125, %v3515_v26 }
0x1fd5   :  { %v3518_v29 = vpop.xlane.xlu1 %3517 }
0x1fd6   :  { %v3521_v18 = vadd.f32 1e-12, %v3519_v27  ;;  %v3520_v32 = vmul.f32 0.03125, %v3518_v29 }
0x1fd8   :  { %4514 = vrsqrt.f32 %v3521_v18  ;;  %v3522_v33 = vadd.f32 1e-12, %v3520_v32 }
0x1fda   :  { %4516 = vrsqrt.f32 %v3522_v33 }
0x1fe2   :  { %v4515_v53 = vpop.eup %4514 }
0x1fe3   :  { %v3525_v61 = vmul.f32 %v4515_v53, %v3509_v20 }
0x1fe4   :  { %v4517_v28 = vpop.eup %4516 }
0x1fe5   :  { %v3531_v34 = vmul.f32 %v3963_v57, %v3525_v61  ;;  %v3526_v35 = vmul.f32 %v4517_v28, %v3510_v22 }
0x1fe7   :  { %v3532_v37 = vmul.f32 %v3963_v57, %v3526_v35  ;;  %v5123_v38 = vadd.f32 %v3964_v36, %v3531_v34 }
0x1fe9   :  { %v5125_v39 = vadd.f32 %v3964_v36, %v3532_v37 }
0x1feb   :  { %v3539_v40 = vpack.c.bf16 %v5125_v39, %v5123_v38 }
0x1fed   :  { %4322 = vmatmul.mubr.msk.bf16.vlgmr.msra.gmra.mrb[56].mxu1 %vm172_vm4, %v3539_v40 }
0x1fee   :  { %4341 = vmatprep.mubr.msk.bf16.mxu1 %vm4610_vm0, %v4609_v1 }
0x20c0   :  { %v3598_v41 = vpop.f32.mrb[56].mxu1 }
0x20c1   :  { %v3599_v45 = vadd.f32 %v3965_v46, %v3598_v41  ;;  %v4323_v48 = vpop.f32.mrb[57].mxu1 }
0x20c2   :  { %v3601_v50 = vpop.f32.mrb[58].mxu1 }
0x20c3   :  { %v3607_v51 = vmul.f32 0.70710677, %v3599_v45  ;;  %v3602_v54 = vadd.f32 %v3965_v46, %v3601_v50  ;;  %v4324_v55 = vpop.f32.mrb[59].mxu1  ;;  %v3605_v34 = vmul.f32 0.5, %v3599_v45 }
0x20c5   :  { %v3609_v56 = vand.u32 2147483647, %v3607_v51  ;;  %v3608_v58 = vmul.f32 0.70710677, %v3602_v54  ;;  %vm3647_vm11 = vcmp.ge.f32.partialorder %v3607_v51, 0.0  ;;  %v3606_v35 = vmul.f32 0.5, %v3602_v54 }
0x20c7   :  { %v3611_v59 = vmul.f32 0.3275911, %v3609_v56  ;;  %v3610_v60 = vand.u32 2147483647, %v3608_v58  ;;  %v3635_v63 = vsub.f32 0.0, %v3609_v56  ;;  %vm3648_vm12 = vcmp.ge.f32.partialorder %v3608_v58, 0.0 }
0x20c9   :  { %v3613_v49 = vadd.f32 1.0, %v3611_v59  ;;  %v3612_v62 = vmul.f32 0.3275911, %v3610_v60  ;;  %v3636_v0 = vsub.f32 0.0, %v3610_v60  ;;  %v3637_v3 = vmul.f32 %v3635_v63, %v3609_v56 }
0x20cb   :  { %4518 = vrcp.f32 %v3613_v49  ;;  %v3614_v31 = vadd.f32 1.0, %v3612_v62  ;;  %v3638_v47 = vmul.f32 %v3636_v0, %v3610_v60  ;;  %v3639_v6 = vmul.f32 1.442695, %v3637_v3 }
0x20cd   :  { %4520 = vrcp.f32 %v3614_v31  ;;  %v3641_v11 = vmul.f32 1.442695, %v3638_v47 }
0x20ce   :  { %4522 = vpow2.f32 %v3639_v6 }
0x20cf   :  { %4524 = vpow2.f32 %v3641_v11  ;;  %v3976_v11 = vld [vmem:[#allocation5 + $0xf] ss:$0 sm:$0xff] }
0x20d5   :  { %v4519_v2 = vpop.eup %4518 }
0x20d6   :  { %v3617_v30 = vmul.f32 1.0614054, %v4519_v2 }
0x20d7   :  { %v4521_v4 = vpop.eup %4520 }
0x20d8   :  { %v3619_v5 = vadd.f32 -1.4531521, %v3617_v30  ;;  %v3618_v7 = vmul.f32 1.0614054, %v4521_v4  ;;  %v4523_v15 = vpop.eup %4522 }
0x20d9   :  { %v4525_v27 = vpop.eup %4524 }
0x20da   :  { %v3621_v8 = vmul.f32 %v4519_v2, %v3619_v5  ;;  %v3620_v9 = vadd.f32 -1.4531521, %v3618_v7 }
0x20dc   :  { %v3623_v10 = vadd.f32 1.4214138, %v3621_v8  ;;  %v3622_v13 = vmul.f32 %v4521_v4, %v3620_v9  ;;  %v3975_v8 = vld [vmem:[#allocation5 + $0xe] ss:$0 sm:$0xff] }
0x20de   :  { %v3625_v14 = vmul.f32 %v4519_v2, %v3623_v10  ;;  %v3624_v19 = vadd.f32 1.4214138, %v3622_v13 }
0x20e0   :  { %v3627_v52 = vadd.f32 -0.28449672, %v3625_v14  ;;  %v3626_v20 = vmul.f32 %v4521_v4, %v3624_v19 }
0x20e2   :  { %v3629_v21 = vmul.f32 %v4519_v2, %v3627_v52  ;;  %v3628_v22 = vadd.f32 -0.28449672, %v3626_v20 }
0x20e4   :  { %v3631_v23 = vadd.f32 0.2548296, %v3629_v21  ;;  %v3630_v24 = vmul.f32 %v4521_v4, %v3628_v22 }
0x20e6   :  { %v3633_v25 = vmul.f32 %v4519_v2, %v3631_v23  ;;  %v3632_v17 = vadd.f32 0.2548296, %v3630_v24  ;;  %v4429_v2 = vld [vmem:[#allocation2 + $0xe8] sm:$0xff]  }
0x20e8   :  { %v3643_v16 = vmul.f32 %v4523_v15, %v3633_v25  ;;  %v3634_v26 = vmul.f32 %v4521_v4, %v3632_v17  ;;  %v3977_v17 = vld [vmem:[#allocation5 + $0x1a] ss:$0 sm:$0xff] }
0x20ea   :  { %v3645_v29 = vsub.f32 1.0, %v3643_v16  ;;  %v3644_v18 = vmul.f32 %v4525_v27, %v3634_v26 }
0x20ec   :  { %v3649_v32 = vsub.f32 0.0, %v3645_v29  ;;  %v3646_v33 = vsub.f32 1.0, %v3644_v18 }
0x20ee   :  { %v3651_v53 = vsel %vm3647_vm11, %v3645_v29, %v3649_v32  ;;  %v3650_v57 = vsub.f32 0.0, %v3646_v33 }
0x20ef   :  { %v3653_v61 = vadd.f32 1.0, %v3651_v53 }
0x20f0   :  { %v3652_v28 = vsel %vm3648_vm12, %v3646_v33, %v3650_v57 }
0x20f1   :  { %v3654_v36 = vadd.f32 1.0, %v3652_v28  ;;  %v3655_v37 = vmul.f32 %v3653_v61, %v3605_v34 }
0x20f3   :  { %v3656_v40 = vmul.f32 %v3654_v36, %v3606_v35 }
0x20f5   :  { %v3657_v12 = vpack.c.bf16 %v3656_v40, %v3655_v37 }
0x20f7   :  { %4334 = vmatmul.mubr.msk.bf16.vlgmr.msra.gmra.mrb[40].mxu0 %vm1930_vm10, %v3657_v12 }
0x21ca   :  { %v3732_v43 = vpop.f32.mrb[40].mxu0 }
0x21cb   :  { %v3733_v44 = vadd.f32 %v3969_v42, %v3732_v43  ;;  %v4335_v46 = vpop.f32.mrb[41].mxu0 }
0x21cc   :  { %v3735_v41 = vpop.f32.mrb[42].mxu0 }
0x21cd   :  { %v3736_v48 = vadd.f32 %v3969_v42, %v3735_v41  ;;  %v4336_v50 = vpop.f32.mrb[43].mxu0  ;;  %v3739_v51 = vadd.f32 %v3733_v44, %v5123_v38 }
0x21cf   :  { %v3740_v55 = vadd.f32 %v3736_v48, %v5125_v39  ;;  %v3743_v45 = vsel %vm172_vm4, %v3739_v51, 0.0  ;;  %v4428_v39 = vld [vmem:[#allocation2 + $0xe0] sm:$0xff]  }
0x21d0   :  { %3744 = vadd.xlane.f32.xlu1 %v3743_v45  ;;  %4338 = vmatpush3.bf16.msra.mxu1 %v4428_v39 }
0x21d1   :  { %v3746_v54 = vsel %vm172_vm4, %v3740_v55, 0.0  ;;  %4339 = vmatprep.subr.bf16.mxu1 %v4609_v1 }
0x21d2   :  { %3747 = vadd.xlane.f32.xlu0 %v3746_v54 }
0x21d4   :  { %4340 = vmatpush3.bf16.msra.mxu1 %v4429_v2 }
0x225d   :  { %v3745_v56 = vpop.xlane.xlu1 %3744 }
0x225e   :  { %v3749_v58 = vmul.f32 0.03125, %v3745_v56 }
0x225f   :  { %v3748_v59 = vpop.xlane.xlu0 %3747 }
0x2260   :  { %v3751_v60 = vsub.f32 %v3739_v51, %v3749_v58  ;;  %v3750_v49 = vmul.f32 0.03125, %v3748_v59 }
0x2262   :  { %v3752_v62 = vsub.f32 %v3740_v55, %v3750_v49  ;;  %v3753_v31 = vmul.f32 %v3751_v60, %v3751_v60 }
0x2264   :  { %v3755_v63 = vsel %vm172_vm4, %v3753_v31, 0.0  ;;  %v3754_v0 = vmul.f32 %v3752_v62, %v3752_v62 }
0x2265   :  { %3756 = vadd.xlane.f32.xlu1 %v3755_v63 }
0x2266   :  { %v3758_v38 = vsel %vm172_vm4, %v3754_v0, 0.0 }
0x2267   :  { %3759 = vadd.xlane.f32.xlu0 %v3758_v38 }
0x22f2   :  { %v3757_v3 = vpop.xlane.xlu1 %3756 }
0x22f3   :  { %v3761_v30 = vmul.f32 0.03125, %v3757_v3 }
0x22f4   :  { %v3760_v4 = vpop.xlane.xlu0 %3759 }
0x22f5   :  { %v3763_v5 = vadd.f32 1e-12, %v3761_v30  ;;  %v3762_v47 = vmul.f32 0.03125, %v3760_v4 }
0x22f7   :  { %4526 = vrsqrt.f32 %v3763_v5  ;;  %v3764_v6 = vadd.f32 1e-12, %v3762_v47 }
0x22f9   :  { %4528 = vrsqrt.f32 %v3764_v6 }
0x2301   :  { %v4527_v7 = vpop.eup %4526 }
0x2302   :  { %v3767_v9 = vmul.f32 %v4527_v7, %v3751_v60 }
0x2303   :  { %v4529_v10 = vpop.eup %4528 }
0x2304   :  { %v3773_v13 = vmul.f32 %v3975_v8, %v3767_v9  ;;  %v3768_v14 = vmul.f32 %v4529_v10, %v3752_v62 }
0x2306   :  { %v3779_v19 = vadd.f32 %v3976_v11, %v3773_v13  ;;  %v3774_v52 = vmul.f32 %v3975_v8, %v3768_v14 }
0x2308   :  { %v3780_v20 = vadd.f32 %v3976_v11, %v3774_v52  ;;  %v3786_v1 = vpack.c.bf16 %v3779_v19, %v3779_v19 }
0x230a   :  { %v3787_v21 = vpack.c.bf16 %v3780_v20, %v3780_v20  ;;  %v3794_v23 = vunpack.c.l.b16 %v3786_v1 }
0x230c   :  { %v3795_v22 = vunpack.c.l.b16 %v3787_v21 }
0x230e   :  { %v3796_v24 = vrot.slane %v3795_v22, 7 }
0x2310   :  { %v3798_v25 = vsel %vm3797_vm13, %v3796_v24, %v3794_v23 }
0x2311   :  { %v3799_v15 = vpack.c.b16 %v3798_v25, %v3798_v25 }
0x2313   :  { %4342 = vmatmul.mubr.msk.bf16.vlgmr.msra.gmra.mrb[60].mxu1 %vm172_vm4, %v3799_v15 }
0x23e6   :  { %v3849_v16 = vpop.f32.mrb[60].mxu1 }
0x23e7   :  { %v3850_v26 = vadd.f32 %v3977_v17, %v3849_v16  ;;  %v4343_v27 = vpop.f32.mrb[61].mxu1 }
0x23e8   :  { %v3852_v29 = vpop.f32.mrb[62].mxu1 }
0x23e9   :  { %v4344_v18 = vpop.f32.mrb[63].mxu1  ;;  %3856 = vst.msk [vmem:[#allocation7] sm:$0x3] %vm3855_vm14, %v3850_v26 }
0x23ea   :  { %4585 = shalt.err (!%p4582_p6)
}
0x23eb   :  { %s4586_s10 = scalar_lea.hbm %s5160_s4, 32 }
0x23ec   :  { %p4587_p7 = scmp.ne.s32.totalorder %s5160_s4, %s4586_s10  ;;  %p4590_p8 = scmp.lt.u32.totalorder %s4586_s10, %s5160_s4 }
0x23ee   :  { %p4592_p9 = pnand %p4590_p8, %p4587_p7 }
0x23f0   :  { %4595 = shalt.err (!%p4592_p9)
}
0x23f1   :  { %3866 = dma.vmem_to_hbm [thread:$0]  %s3864_s6, 32, %s5160_s4, [#allocation4]  }
0x23f2   :  { %4600 = dma.done.wait [#allocation4], 32  }
0x23f3   :  { %4601 = vsyncadd [#allocation4], 4294967264 }
0x23f4   :  { %3870 = vsyncpa [#allocation3], 1 }
0x23f5   :  { %3871 = vsyncpa [#allocation6], 1 }
0x23f6   :  { %3872 = vsyncpa [#allocation4], 1 }

</bundles_post_ra>
